<compile_context>
chip_gen: v7x
topology: tpu7x:2x2x1
jax: 0.10.0
libtpu: 0.0.40
codegen_flags: <defaults>
</compile_context>

<pallas_src>
import math

import jax
import jax.numpy as jnp
from jax import lax
from jax.experimental import pallas as pl
from jax.experimental.pallas import tpu as pltpu

# Model hyperparameters (small, consistent with the module's forward).
N_LAYERS = 2      # layers in the stack
S = 8             # sequence length  (PyTorch dim L)
B = 2             # batch            (PyTorch dim N)
D = 32            # d_model          (PyTorch dim E)
NH = 4            # nhead
HD = D // NH      # head dim
FF = 64           # dim_feedforward
EPS = 1e-5        # layer_norm_eps
R = S * B         # rows of the flattened residual stream (s-major: r = s*B + b)


def _layer_norm(v, w, b):
    mu = jnp.mean(v, axis=-1, keepdims=True)
    var = jnp.mean((v - mu) ** 2, axis=-1, keepdims=True)
    return (v - mu) * lax.rsqrt(var + EPS) * w + b


def stack_kernel(x_ref, vecs_ref, wqkv_ref, bqkv_ref, wout_ref,
                 w1_ref, b1_ref, w2_ref, o_ref):
    """Single invocation: runs the whole layer stack on a VMEM-resident state."""
    # Residual stream keeps the input's s-major row order (row = s*B + b),
    # so no entry/exit relayout is needed.
    x = x_ref[...]                                               # (R, D) f32

    # Same-batch attention mask over the flat row axis, hoisted out of all
    # loops.  Per-head attention uses full (R, R) score tiles; cross-batch
    # entries are masked to -1e30 (-> exactly 0 after softmax).
    ri = lax.broadcasted_iota(jnp.int32, (R, R), 0)
    ci = lax.broadcasted_iota(jnp.int32, (R, R), 1)
    same_batch = (ri % B) == (ci % B)
    neg_big = jnp.float32(-1e30)

    # Fully unrolled layer loop (N_LAYERS is tiny; weights indexed statically).
    for l in range(N_LAYERS):
        vl = vecs_ref[l]                         # (6, D) packed small vectors
        ln1w, ln1b = vl[0:1], vl[1:2]
        b_out = vl[2:3]
        ln2w, ln2b = vl[3:4], vl[4:5]
        b2 = vl[5:6]

        # ---------------- self-attention block (pre-norm) ----------------
        xn = _layer_norm(x, ln1w, ln1b)                          # (R, D)
        # Fused QKV projection: one (R,D)@(D,3D) matmul; 1/sqrt(HD) is
        # pre-folded into the q columns of the weight and bias.
        qkv = jnp.dot(xn, wqkv_ref[l],
                      preferred_element_type=jnp.float32) + bqkv_ref[l]  # (R,3D)

        ctx_heads = []
        for h in range(NH):                      # static unroll over heads
            q_h = qkv[:, h * HD:(h + 1) * HD]                    # (R, HD)
            k_h = qkv[:, D + h * HD:D + (h + 1) * HD]            # (R, HD)
            v_h = qkv[:, 2 * D + h * HD:2 * D + (h + 1) * HD]    # (R, HD)
            s_h = lax.dot_general(q_h, k_h, (((1,), (1,)), ((), ())),
                                  preferred_element_type=jnp.float32)  # (R, R)
            s_h = jnp.where(same_batch, s_h, neg_big)
            s_h = s_h - jnp.max(s_h, axis=-1, keepdims=True)
            p_h = jnp.exp(s_h)
            p_h = p_h * pl.reciprocal(jnp.sum(p_h, axis=-1, keepdims=True),
                                      approx=True)               # EUP slot
            ctx_heads.append(jnp.dot(p_h, v_h,
                                     preferred_element_type=jnp.float32))
        ctx = jnp.concatenate(ctx_heads, axis=1)                 # (R, D)

        # Fused output projection: single (R,D)@(D,D) matmul.
        attn = jnp.dot(ctx, wout_ref[l],
                       preferred_element_type=jnp.float32) + b_out
        x = x + attn                             # dropout1 == identity (eval)

        # ---------------- feed-forward block (pre-norm) ----------------
        xn2 = _layer_norm(x, ln2w, ln2b)
        hact = jnp.dot(xn2, w1_ref[l],
                       preferred_element_type=jnp.float32) + b1_ref[l]
        hact = jnp.maximum(hact, 0.0)            # ReLU
        x = x + jnp.dot(hact, w2_ref[l],
                        preferred_element_type=jnp.float32) + b2

    o_ref[...] = x                               # dense (R, D) store


_PARAM_ORDER = ("vecs", "w_qkv", "b_qkv", "w_out", "w1", "b1", "w2")


def pack_params(layer_params):
    """Stack per-layer PyTorch-layout params along a leading layer axis and
    pre-transpose / pre-scale them ONCE so the kernel does no weight relayout.
    All the small (D,)/(FF,) vectors except b_qkv/b1 are packed into one array."""
    scale = 1.0 / math.sqrt(HD)

    def one(p):
        w = p["in_proj_w"]                       # (3D, D): rows [q; k; v]
        b = p["in_proj_b"]                       # (3D,)
        w_scaled = jnp.concatenate([w[:D] * scale, w[D:]], axis=0)   # q rows scaled
        b_scaled = jnp.concatenate([b[:D] * scale, b[D:]], axis=0)
        return {
            "vecs": jnp.stack([p["ln1_w"], p["ln1_b"], p["out_proj_b"],
                               p["ln2_w"], p["ln2_b"], p["b2"]], axis=0),  # (6, D)
            "w_qkv": w_scaled.T,                 # (D, 3D): x @ w_qkv
            "b_qkv": b_scaled.reshape(1, 3 * D),
            "w_out": p["out_proj_w"].T,          # (D, D)
            "w1": p["w1"].T,                     # (D, FF)
            "b1": p["b1"].reshape(1, FF),
            "w2": p["w2"].T,                     # (FF, D)
        }

    per_layer = [one(p) for p in layer_params]
    return {k: jnp.stack([lp[k] for lp in per_layer], axis=0)
            for k in _PARAM_ORDER}


def decoder_layer_stack(x_sbd, packed):
    """x_sbd: (S, B, D) float32 — PyTorch (L, N, E) layout. Returns (S, B, D)."""
    x2d = x_sbd.reshape(R, D)                    # free, contiguous reshape
    vmem_spec = pl.BlockSpec(memory_space=pltpu.MemorySpace.VMEM)
    out2d = pl.pallas_call(
        stack_kernel,
        out_shape=jax.ShapeDtypeStruct((R, D), jnp.float32),
        in_specs=[vmem_spec] * (1 + len(_PARAM_ORDER)),
        out_specs=vmem_spec,
    )(x2d, *[packed[k] for k in _PARAM_ORDER])
    return out2d.reshape(S, B, D)


# ----------------------------- reference ------------------------------------
def reference(x_sbd, layer_params):
    """Pure-JAX reference of the same stack (eval-mode PyTorch semantics)."""
    def ln(v, w, b):
        mu = jnp.mean(v, axis=-1, keepdims=True)
        var = jnp.mean((v - mu) ** 2, axis=-1, keepdims=True)
        return (v - mu) / jnp.sqrt(var + EPS) * w + b

    def layer(x, p):                                  # x: (B, S, D)
        xn = ln(x, p["ln1_w"], p["ln1_b"])
        qkv = jnp.einsum("bsd,ed->bse", xn, p["in_proj_w"]) + p["in_proj_b"]
        q, k, v = qkv[..., :D], qkv[..., D:2 * D], qkv[..., 2 * D:]

        def split(t):  # (B, S, D) -> (B, NH, S, HD)
            return jnp.transpose(t.reshape(B, S, NH, HD), (0, 2, 1, 3))

        qh, kh, vh = split(q), split(k), split(v)
        s = jnp.einsum("bhqd,bhkd->bhqk", qh, kh) / math.sqrt(HD)
        pr = jax.nn.softmax(s, axis=-1)
        o = jnp.einsum("bhqk,bhkd->bhqd", pr, vh)
        o = jnp.transpose(o, (0, 2, 1, 3)).reshape(B, S, D)
        o = jnp.einsum("bsd,ed->bse", o, p["out_proj_w"]) + p["out_proj_b"]
        x = x + o

        xn2 = ln(x, p["ln2_w"], p["ln2_b"])
        h = jnp.maximum(jnp.einsum("bsd,fd->bsf", xn2, p["w1"]) + p["b1"], 0.0)
        return x + jnp.einsum("bsf,df->bsd", h, p["w2"]) + p["b2"]

    x = jnp.transpose(x_sbd, (1, 0, 2))               # (B, S, D)
    for p in layer_params:
        x = layer(x, p)
    return jnp.transpose(x, (1, 0, 2))                # back to (S, B, D)


def make_layer_params(key):
    ks = jax.random.split(key, 8)
    sc = 0.05
    return {
        "ln1_w": jnp.ones((D,), jnp.float32),
        "ln1_b": jnp.zeros((D,), jnp.float32),
        "in_proj_w": sc * jax.random.normal(ks[0], (3 * D, D), jnp.float32),
        "in_proj_b": sc * jax.random.normal(ks[1], (3 * D,), jnp.float32),
        "out_proj_w": sc * jax.random.normal(ks[2], (D, D), jnp.float32),
        "out_proj_b": sc * jax.random.normal(ks[3], (D,), jnp.float32),
        "ln2_w": jnp.ones((D,), jnp.float32),
        "ln2_b": jnp.zeros((D,), jnp.float32),
        "w1": sc * jax.random.normal(ks[4], (FF, D), jnp.float32),
        "b1": sc * jax.random.normal(ks[5], (FF,), jnp.float32),
        "w2": sc * jax.random.normal(ks[6], (D, FF), jnp.float32),
        "b2": sc * jax.random.normal(ks[7], (D,), jnp.float32),
    }


if __name__ == "__main__":
    key = jax.random.PRNGKey(0)
    k_x, k_p = jax.random.split(key)
    # PyTorch batch_first=False layout: (seq, batch, d_model)
    x = jax.random.normal(k_x, (S, B, D), jnp.float32)
    layer_params = [make_layer_params(k) for k in jax.random.split(k_p, N_LAYERS)]
    packed = pack_params(layer_params)

    out = jax.block_until_ready(decoder_layer_stack(x, packed))
    ref = jax.block_until_ready(reference(x, layer_params))

    assert out.shape == (S, B, D)
    err = float(jnp.max(jnp.abs(out - ref)))
    # 2e-3 tolerance covers the approx (EUP) reciprocal in the softmax denominator.
    assert err < 2e-3, f"mismatch vs pure-JAX reference: max abs err = {err}"
    print("KERNEL_OK")
</pallas_src>

<mosaic_0001>
module attributes {stable_mosaic.version = 11 : i64} {
  func.func @stack_kernel(%arg0: memref<16x32xf32, #tpu.memory_space<vmem>>, %arg1: memref<2x6x32xf32, #tpu.memory_space<vmem>>, %arg2: memref<2x32x96xf32, #tpu.memory_space<vmem>>, %arg3: memref<2x1x96xf32, #tpu.memory_space<vmem>>, %arg4: memref<2x32x32xf32, #tpu.memory_space<vmem>>, %arg5: memref<2x32x64xf32, #tpu.memory_space<vmem>>, %arg6: memref<2x1x64xf32, #tpu.memory_space<vmem>>, %arg7: memref<2x64x32xf32, #tpu.memory_space<vmem>>, %arg8: memref<16x32xf32, #tpu.memory_space<vmem>>) attributes {dimension_semantics = [], scalar_prefetch = 0 : i64, scratch_operands = 0 : i64, tpu.core_type = #tpu.core_type<tc>} {
    %c0 = arith.constant 0 : index
    %c0_0 = arith.constant 0 : index
    %0 = vector.load %arg0[%c0, %c0_0] : memref<16x32xf32, #tpu.memory_space<vmem>>, vector<16x32xf32>
    %1 = tpu.iota {dimensions = array<i32: 0>} : vector<16x16xi32>
    %2 = tpu.iota {dimensions = array<i32: 1>} : vector<16x16xi32>
    %c2_i32 = arith.constant 2 : i32
    %c0_i32 = arith.constant 0 : i32
    %3 = arith.cmpi eq, %c2_i32, %c0_i32 : i32
    %c1_i32 = arith.constant 1 : i32
    %4 = arith.select %3, %c1_i32, %c2_i32 : i32
    %5 = vector.broadcast %4 : i32 to vector<16x16xi32>
    %6 = arith.remsi %1, %5 : vector<16x16xi32>
    %c0_i32_1 = arith.constant 0 : i32
    %7 = vector.broadcast %c0_i32_1 : i32 to vector<16x16xi32>
    %8 = arith.cmpi ne, %6, %7 : vector<16x16xi32>
    %c0_i32_2 = arith.constant 0 : i32
    %9 = vector.broadcast %c0_i32_2 : i32 to vector<16x16xi32>
    %10 = arith.cmpi slt, %6, %9 : vector<16x16xi32>
    %c0_i32_3 = arith.constant 0 : i32
    %11 = arith.cmpi slt, %4, %c0_i32_3 : i32
    %12 = vector.broadcast %11 : i1 to vector<16x16xi1>
    %13 = vector.broadcast %12 : vector<16x16xi1> to vector<16x16xi1>
    %14 = arith.xori %10, %13 : vector<16x16xi1>
    %15 = arith.andi %14, %8 : vector<16x16xi1>
    %16 = vector.broadcast %4 : i32 to vector<16x16xi32>
    %17 = arith.addi %6, %16 : vector<16x16xi32>
    %18 = arith.select %15, %17, %6 : vector<16x16xi1>, vector<16x16xi32>
    %c2_i32_4 = arith.constant 2 : i32
    %c0_i32_5 = arith.constant 0 : i32
    %19 = arith.cmpi eq, %c2_i32_4, %c0_i32_5 : i32
    %c1_i32_6 = arith.constant 1 : i32
    %20 = arith.select %19, %c1_i32_6, %c2_i32_4 : i32
    %21 = vector.broadcast %20 : i32 to vector<16x16xi32>
    %22 = arith.remsi %2, %21 : vector<16x16xi32>
    %c0_i32_7 = arith.constant 0 : i32
    %23 = vector.broadcast %c0_i32_7 : i32 to vector<16x16xi32>
    %24 = arith.cmpi ne, %22, %23 : vector<16x16xi32>
    %c0_i32_8 = arith.constant 0 : i32
    %25 = vector.broadcast %c0_i32_8 : i32 to vector<16x16xi32>
    %26 = arith.cmpi slt, %22, %25 : vector<16x16xi32>
    %c0_i32_9 = arith.constant 0 : i32
    %27 = arith.cmpi slt, %20, %c0_i32_9 : i32
    %28 = vector.broadcast %27 : i1 to vector<16x16xi1>
    %29 = vector.broadcast %28 : vector<16x16xi1> to vector<16x16xi1>
    %30 = arith.xori %26, %29 : vector<16x16xi1>
    %31 = arith.andi %30, %24 : vector<16x16xi1>
    %32 = vector.broadcast %20 : i32 to vector<16x16xi32>
    %33 = arith.addi %22, %32 : vector<16x16xi32>
    %34 = arith.select %31, %33, %22 : vector<16x16xi1>, vector<16x16xi32>
    %35 = arith.cmpi eq, %18, %34 : vector<16x16xi32>
    %c0_10 = arith.constant 0 : index
    %c0_11 = arith.constant 0 : index
    %c0_12 = arith.constant 0 : index
    %36 = vector.load %arg1[%c0_10, %c0_11, %c0_12] : memref<2x6x32xf32, #tpu.memory_space<vmem>>, vector<1x6x32xf32>
    %37 = vector.shape_cast %36 : vector<1x6x32xf32> to vector<6x32xf32>
    %38 = vector.extract_strided_slice %37 {offsets = [0, 0], sizes = [1, 32], strides = [1, 1]} : vector<6x32xf32> to vector<1x32xf32>
    %39 = vector.extract_strided_slice %37 {offsets = [1, 0], sizes = [1, 32], strides = [1, 1]} : vector<6x32xf32> to vector<1x32xf32>
    %40 = vector.extract_strided_slice %37 {offsets = [2, 0], sizes = [1, 32], strides = [1, 1]} : vector<6x32xf32> to vector<1x32xf32>
    %41 = vector.extract_strided_slice %37 {offsets = [3, 0], sizes = [1, 32], strides = [1, 1]} : vector<6x32xf32> to vector<1x32xf32>
    %42 = vector.extract_strided_slice %37 {offsets = [4, 0], sizes = [1, 32], strides = [1, 1]} : vector<6x32xf32> to vector<1x32xf32>
    %43 = vector.extract_strided_slice %37 {offsets = [5, 0], sizes = [1, 32], strides = [1, 1]} : vector<6x32xf32> to vector<1x32xf32>
    %cst = arith.constant dense<0.000000e+00> : vector<16xf32>
    %44 = vector.multi_reduction <add>, %0, %cst [1] : vector<16x32xf32> to vector<16xf32>
    %45 = vector.shape_cast %44 : vector<16xf32> to vector<16x1xf32>
    %cst_13 = arith.constant 3.200000e+01 : f32
    %46 = vector.broadcast %cst_13 : f32 to vector<16x1xf32>
    %47 = arith.divf %45, %46 : vector<16x1xf32>
    %48 = vector.broadcast %47 : vector<16x1xf32> to vector<16x32xf32>
    %49 = arith.subf %0, %48 : vector<16x32xf32>
    %50 = arith.mulf %49, %49 : vector<16x32xf32>
    %cst_14 = arith.constant dense<0.000000e+00> : vector<16xf32>
    %51 = vector.multi_reduction <add>, %50, %cst_14 [1] : vector<16x32xf32> to vector<16xf32>
    %52 = vector.shape_cast %51 : vector<16xf32> to vector<16x1xf32>
    %cst_15 = arith.constant 3.200000e+01 : f32
    %53 = vector.broadcast %cst_15 : f32 to vector<16x1xf32>
    %54 = arith.divf %52, %53 : vector<16x1xf32>
    %55 = vector.broadcast %47 : vector<16x1xf32> to vector<16x32xf32>
    %56 = arith.subf %0, %55 : vector<16x32xf32>
    %cst_16 = arith.constant 9.99999974E-6 : f32
    %57 = vector.broadcast %cst_16 : f32 to vector<16x1xf32>
    %58 = arith.addf %54, %57 : vector<16x1xf32>
    %59 = math.rsqrt %58 : vector<16x1xf32>
    %60 = vector.broadcast %59 : vector<16x1xf32> to vector<16x32xf32>
    %61 = arith.mulf %56, %60 : vector<16x32xf32>
    %62 = vector.broadcast %38 : vector<1x32xf32> to vector<16x32xf32>
    %63 = arith.mulf %61, %62 : vector<16x32xf32>
    %64 = vector.broadcast %39 : vector<1x32xf32> to vector<16x32xf32>
    %65 = arith.addf %63, %64 : vector<16x32xf32>
    %c0_17 = arith.constant 0 : index
    %c0_18 = arith.constant 0 : index
    %c0_19 = arith.constant 0 : index
    %66 = vector.load %arg2[%c0_17, %c0_18, %c0_19] : memref<2x32x96xf32, #tpu.memory_space<vmem>>, vector<1x32x96xf32>
    %67 = vector.shape_cast %66 : vector<1x32x96xf32> to vector<32x96xf32>
    %cst_20 = arith.constant dense<0.000000e+00> : vector<16x96xf32>
    %68 = tpu.matmul %65, %67, %cst_20 {dimension_numbers = #tpu.dot_dimension_numbers<[1], [0], [0], [1], [0, 0, 1, 1], [], []>} : vector<16x32xf32>, vector<32x96xf32>, vector<16x96xf32> -> vector<16x96xf32>
    %c0_21 = arith.constant 0 : index
    %c0_22 = arith.constant 0 : index
    %c0_23 = arith.constant 0 : index
    %69 = vector.load %arg3[%c0_21, %c0_22, %c0_23] : memref<2x1x96xf32, #tpu.memory_space<vmem>>, vector<1x1x96xf32>
    %70 = vector.shape_cast %69 : vector<1x1x96xf32> to vector<1x96xf32>
    %71 = vector.broadcast %70 : vector<1x96xf32> to vector<16x96xf32>
    %72 = arith.addf %68, %71 : vector<16x96xf32>
    %73 = vector.extract_strided_slice %72 {offsets = [0, 0], sizes = [16, 8], strides = [1, 1]} : vector<16x96xf32> to vector<16x8xf32>
    %74 = vector.extract_strided_slice %72 {offsets = [0, 32], sizes = [16, 8], strides = [1, 1]} : vector<16x96xf32> to vector<16x8xf32>
    %75 = vector.extract_strided_slice %72 {offsets = [0, 64], sizes = [16, 8], strides = [1, 1]} : vector<16x96xf32> to vector<16x8xf32>
    %cst_24 = arith.constant dense<0.000000e+00> : vector<16x16xf32>
    %76 = tpu.matmul %73, %74, %cst_24 {dimension_numbers = #tpu.dot_dimension_numbers<[1], [1], [0], [0], [0, 0, 1, 0], [], []>} : vector<16x8xf32>, vector<16x8xf32>, vector<16x16xf32> -> vector<16x16xf32>
    %cst_25 = arith.constant -1.000000e+30 : f32
    %77 = vector.broadcast %cst_25 : f32 to vector<16x16xf32>
    %78 = arith.select %35, %76, %77 : vector<16x16xi1>, vector<16x16xf32>
    %cst_26 = arith.constant dense<0xFF800000> : vector<16xf32>
    %79 = vector.multi_reduction <maximumf>, %78, %cst_26 [1] : vector<16x16xf32> to vector<16xf32>
    %80 = vector.shape_cast %79 : vector<16xf32> to vector<16x1xf32>
    %81 = vector.broadcast %80 : vector<16x1xf32> to vector<16x16xf32>
    %82 = arith.subf %78, %81 : vector<16x16xf32>
    %83 = math.exp %82 : vector<16x16xf32>
    %cst_27 = arith.constant dense<0.000000e+00> : vector<16xf32>
    %84 = vector.multi_reduction <add>, %83, %cst_27 [1] : vector<16x16xf32> to vector<16xf32>
    %85 = vector.shape_cast %84 : vector<16xf32> to vector<16x1xf32>
    %86 = tpu.reciprocal %85 {approx = true} : vector<16x1xf32> -> vector<16x1xf32>
    %87 = vector.broadcast %86 : vector<16x1xf32> to vector<16x16xf32>
    %88 = arith.mulf %83, %87 : vector<16x16xf32>
    %cst_28 = arith.constant dense<0.000000e+00> : vector<16x8xf32>
    %89 = tpu.matmul %88, %75, %cst_28 {dimension_numbers = #tpu.dot_dimension_numbers<[1], [0], [0], [1], [0, 0, 1, 1], [], []>} : vector<16x16xf32>, vector<16x8xf32>, vector<16x8xf32> -> vector<16x8xf32>
    %90 = vector.extract_strided_slice %72 {offsets = [0, 8], sizes = [16, 8], strides = [1, 1]} : vector<16x96xf32> to vector<16x8xf32>
    %91 = vector.extract_strided_slice %72 {offsets = [0, 40], sizes = [16, 8], strides = [1, 1]} : vector<16x96xf32> to vector<16x8xf32>
    %92 = vector.extract_strided_slice %72 {offsets = [0, 72], sizes = [16, 8], strides = [1, 1]} : vector<16x96xf32> to vector<16x8xf32>
    %cst_29 = arith.constant dense<0.000000e+00> : vector<16x16xf32>
    %93 = tpu.matmul %90, %91, %cst_29 {dimension_numbers = #tpu.dot_dimension_numbers<[1], [1], [0], [0], [0, 0, 1, 0], [], []>} : vector<16x8xf32>, vector<16x8xf32>, vector<16x16xf32> -> vector<16x16xf32>
    %cst_30 = arith.constant -1.000000e+30 : f32
    %94 = vector.broadcast %cst_30 : f32 to vector<16x16xf32>
    %95 = arith.select %35, %93, %94 : vector<16x16xi1>, vector<16x16xf32>
    %cst_31 = arith.constant dense<0xFF800000> : vector<16xf32>
    %96 = vector.multi_reduction <maximumf>, %95, %cst_31 [1] : vector<16x16xf32> to vector<16xf32>
    %97 = vector.shape_cast %96 : vector<16xf32> to vector<16x1xf32>
    %98 = vector.broadcast %97 : vector<16x1xf32> to vector<16x16xf32>
    %99 = arith.subf %95, %98 : vector<16x16xf32>
    %100 = math.exp %99 : vector<16x16xf32>
    %cst_32 = arith.constant dense<0.000000e+00> : vector<16xf32>
    %101 = vector.multi_reduction <add>, %100, %cst_32 [1] : vector<16x16xf32> to vector<16xf32>
    %102 = vector.shape_cast %101 : vector<16xf32> to vector<16x1xf32>
    %103 = tpu.reciprocal %102 {approx = true} : vector<16x1xf32> -> vector<16x1xf32>
    %104 = vector.broadcast %103 : vector<16x1xf32> to vector<16x16xf32>
    %105 = arith.mulf %100, %104 : vector<16x16xf32>
    %cst_33 = arith.constant dense<0.000000e+00> : vector<16x8xf32>
    %106 = tpu.matmul %105, %92, %cst_33 {dimension_numbers = #tpu.dot_dimension_numbers<[1], [0], [0], [1], [0, 0, 1, 1], [], []>} : vector<16x16xf32>, vector<16x8xf32>, vector<16x8xf32> -> vector<16x8xf32>
    %107 = vector.extract_strided_slice %72 {offsets = [0, 16], sizes = [16, 8], strides = [1, 1]} : vector<16x96xf32> to vector<16x8xf32>
    %108 = vector.extract_strided_slice %72 {offsets = [0, 48], sizes = [16, 8], strides = [1, 1]} : vector<16x96xf32> to vector<16x8xf32>
    %109 = vector.extract_strided_slice %72 {offsets = [0, 80], sizes = [16, 8], strides = [1, 1]} : vector<16x96xf32> to vector<16x8xf32>
    %cst_34 = arith.constant dense<0.000000e+00> : vector<16x16xf32>
    %110 = tpu.matmul %107, %108, %cst_34 {dimension_numbers = #tpu.dot_dimension_numbers<[1], [1], [0], [0], [0, 0, 1, 0], [], []>} : vector<16x8xf32>, vector<16x8xf32>, vector<16x16xf32> -> vector<16x16xf32>
    %cst_35 = arith.constant -1.000000e+30 : f32
    %111 = vector.broadcast %cst_35 : f32 to vector<16x16xf32>
    %112 = arith.select %35, %110, %111 : vector<16x16xi1>, vector<16x16xf32>
    %cst_36 = arith.constant dense<0xFF800000> : vector<16xf32>
    %113 = vector.multi_reduction <maximumf>, %112, %cst_36 [1] : vector<16x16xf32> to vector<16xf32>
    %114 = vector.shape_cast %113 : vector<16xf32> to vector<16x1xf32>
    %115 = vector.broadcast %114 : vector<16x1xf32> to vector<16x16xf32>
    %116 = arith.subf %112, %115 : vector<16x16xf32>
    %117 = math.exp %116 : vector<16x16xf32>
    %cst_37 = arith.constant dense<0.000000e+00> : vector<16xf32>
    %118 = vector.multi_reduction <add>, %117, %cst_37 [1] : vector<16x16xf32> to vector<16xf32>
    %119 = vector.shape_cast %118 : vector<16xf32> to vector<16x1xf32>
    %120 = tpu.reciprocal %119 {approx = true} : vector<16x1xf32> -> vector<16x1xf32>
    %121 = vector.broadcast %120 : vector<16x1xf32> to vector<16x16xf32>
    %122 = arith.mulf %117, %121 : vector<16x16xf32>
    %cst_38 = arith.constant dense<0.000000e+00> : vector<16x8xf32>
    %123 = tpu.matmul %122, %109, %cst_38 {dimension_numbers = #tpu.dot_dimension_numbers<[1], [0], [0], [1], [0, 0, 1, 1], [], []>} : vector<16x16xf32>, vector<16x8xf32>, vector<16x8xf32> -> vector<16x8xf32>
    %124 = vector.extract_strided_slice %72 {offsets = [0, 24], sizes = [16, 8], strides = [1, 1]} : vector<16x96xf32> to vector<16x8xf32>
    %125 = vector.extract_strided_slice %72 {offsets = [0, 56], sizes = [16, 8], strides = [1, 1]} : vector<16x96xf32> to vector<16x8xf32>
    %126 = vector.extract_strided_slice %72 {offsets = [0, 88], sizes = [16, 8], strides = [1, 1]} : vector<16x96xf32> to vector<16x8xf32>
    %cst_39 = arith.constant dense<0.000000e+00> : vector<16x16xf32>
    %127 = tpu.matmul %124, %125, %cst_39 {dimension_numbers = #tpu.dot_dimension_numbers<[1], [1], [0], [0], [0, 0, 1, 0], [], []>} : vector<16x8xf32>, vector<16x8xf32>, vector<16x16xf32> -> vector<16x16xf32>
    %cst_40 = arith.constant -1.000000e+30 : f32
    %128 = vector.broadcast %cst_40 : f32 to vector<16x16xf32>
    %129 = arith.select %35, %127, %128 : vector<16x16xi1>, vector<16x16xf32>
    %cst_41 = arith.constant dense<0xFF800000> : vector<16xf32>
    %130 = vector.multi_reduction <maximumf>, %129, %cst_41 [1] : vector<16x16xf32> to vector<16xf32>
    %131 = vector.shape_cast %130 : vector<16xf32> to vector<16x1xf32>
    %132 = vector.broadcast %131 : vector<16x1xf32> to vector<16x16xf32>
    %133 = arith.subf %129, %132 : vector<16x16xf32>
    %134 = math.exp %133 : vector<16x16xf32>
    %cst_42 = arith.constant dense<0.000000e+00> : vector<16xf32>
    %135 = vector.multi_reduction <add>, %134, %cst_42 [1] : vector<16x16xf32> to vector<16xf32>
    %136 = vector.shape_cast %135 : vector<16xf32> to vector<16x1xf32>
    %137 = tpu.reciprocal %136 {approx = true} : vector<16x1xf32> -> vector<16x1xf32>
    %138 = vector.broadcast %137 : vector<16x1xf32> to vector<16x16xf32>
    %139 = arith.mulf %134, %138 : vector<16x16xf32>
    %cst_43 = arith.constant dense<0.000000e+00> : vector<16x8xf32>
    %140 = tpu.matmul %139, %126, %cst_43 {dimension_numbers = #tpu.dot_dimension_numbers<[1], [0], [0], [1], [0, 0, 1, 1], [], []>} : vector<16x16xf32>, vector<16x8xf32>, vector<16x8xf32> -> vector<16x8xf32>
    %141 = tpu.concatenate %89, %106, %123, %140 in 1 : vector<16x8xf32>, vector<16x8xf32>, vector<16x8xf32>, vector<16x8xf32> -> vector<16x32xf32>
    %c0_44 = arith.constant 0 : index
    %c0_45 = arith.constant 0 : index
    %c0_46 = arith.constant 0 : index
    %142 = vector.load %arg4[%c0_44, %c0_45, %c0_46] : memref<2x32x32xf32, #tpu.memory_space<vmem>>, vector<1x32x32xf32>
    %143 = vector.shape_cast %142 : vector<1x32x32xf32> to vector<32x32xf32>
    %cst_47 = arith.constant dense<0.000000e+00> : vector<16x32xf32>
    %144 = tpu.matmul %141, %143, %cst_47 {dimension_numbers = #tpu.dot_dimension_numbers<[1], [0], [0], [1], [0, 0, 1, 1], [], []>} : vector<16x32xf32>, vector<32x32xf32>, vector<16x32xf32> -> vector<16x32xf32>
    %145 = vector.broadcast %40 : vector<1x32xf32> to vector<16x32xf32>
    %146 = arith.addf %144, %145 : vector<16x32xf32>
    %147 = arith.addf %0, %146 : vector<16x32xf32>
    %cst_48 = arith.constant dense<0.000000e+00> : vector<16xf32>
    %148 = vector.multi_reduction <add>, %147, %cst_48 [1] : vector<16x32xf32> to vector<16xf32>
    %149 = vector.shape_cast %148 : vector<16xf32> to vector<16x1xf32>
    %cst_49 = arith.constant 3.200000e+01 : f32
    %150 = vector.broadcast %cst_49 : f32 to vector<16x1xf32>
    %151 = arith.divf %149, %150 : vector<16x1xf32>
    %152 = vector.broadcast %151 : vector<16x1xf32> to vector<16x32xf32>
    %153 = arith.subf %147, %152 : vector<16x32xf32>
    %154 = arith.mulf %153, %153 : vector<16x32xf32>
    %cst_50 = arith.constant dense<0.000000e+00> : vector<16xf32>
    %155 = vector.multi_reduction <add>, %154, %cst_50 [1] : vector<16x32xf32> to vector<16xf32>
    %156 = vector.shape_cast %155 : vector<16xf32> to vector<16x1xf32>
    %cst_51 = arith.constant 3.200000e+01 : f32
    %157 = vector.broadcast %cst_51 : f32 to vector<16x1xf32>
    %158 = arith.divf %156, %157 : vector<16x1xf32>
    %159 = vector.broadcast %151 : vector<16x1xf32> to vector<16x32xf32>
    %160 = arith.subf %147, %159 : vector<16x32xf32>
    %cst_52 = arith.constant 9.99999974E-6 : f32
    %161 = vector.broadcast %cst_52 : f32 to vector<16x1xf32>
    %162 = arith.addf %158, %161 : vector<16x1xf32>
    %163 = math.rsqrt %162 : vector<16x1xf32>
    %164 = vector.broadcast %163 : vector<16x1xf32> to vector<16x32xf32>
    %165 = arith.mulf %160, %164 : vector<16x32xf32>
    %166 = vector.broadcast %41 : vector<1x32xf32> to vector<16x32xf32>
    %167 = arith.mulf %165, %166 : vector<16x32xf32>
    %168 = vector.broadcast %42 : vector<1x32xf32> to vector<16x32xf32>
    %169 = arith.addf %167, %168 : vector<16x32xf32>
    %c0_53 = arith.constant 0 : index
    %c0_54 = arith.constant 0 : index
    %c0_55 = arith.constant 0 : index
    %170 = vector.load %arg5[%c0_53, %c0_54, %c0_55] : memref<2x32x64xf32, #tpu.memory_space<vmem>>, vector<1x32x64xf32>
    %171 = vector.shape_cast %170 : vector<1x32x64xf32> to vector<32x64xf32>
    %cst_56 = arith.constant dense<0.000000e+00> : vector<16x64xf32>
    %172 = tpu.matmul %169, %171, %cst_56 {dimension_numbers = #tpu.dot_dimension_numbers<[1], [0], [0], [1], [0, 0, 1, 1], [], []>} : vector<16x32xf32>, vector<32x64xf32>, vector<16x64xf32> -> vector<16x64xf32>
    %c0_57 = arith.constant 0 : index
    %c0_58 = arith.constant 0 : index
    %c0_59 = arith.constant 0 : index
    %173 = vector.load %arg6[%c0_57, %c0_58, %c0_59] : memref<2x1x64xf32, #tpu.memory_space<vmem>>, vector<1x1x64xf32>
    %174 = vector.shape_cast %173 : vector<1x1x64xf32> to vector<1x64xf32>
    %175 = vector.broadcast %174 : vector<1x64xf32> to vector<16x64xf32>
    %176 = arith.addf %172, %175 : vector<16x64xf32>
    %cst_60 = arith.constant 0.000000e+00 : f32
    %177 = vector.broadcast %cst_60 : f32 to vector<16x64xf32>
    %178 = arith.maximumf %176, %177 : vector<16x64xf32>
    %c0_61 = arith.constant 0 : index
    %c0_62 = arith.constant 0 : index
    %c0_63 = arith.constant 0 : index
    %179 = vector.load %arg7[%c0_61, %c0_62, %c0_63] : memref<2x64x32xf32, #tpu.memory_space<vmem>>, vector<1x64x32xf32>
    %180 = vector.shape_cast %179 : vector<1x64x32xf32> to vector<64x32xf32>
    %cst_64 = arith.constant dense<0.000000e+00> : vector<16x32xf32>
    %181 = tpu.matmul %178, %180, %cst_64 {dimension_numbers = #tpu.dot_dimension_numbers<[1], [0], [0], [1], [0, 0, 1, 1], [], []>} : vector<16x64xf32>, vector<64x32xf32>, vector<16x32xf32> -> vector<16x32xf32>
    %182 = arith.addf %147, %181 : vector<16x32xf32>
    %183 = vector.broadcast %43 : vector<1x32xf32> to vector<16x32xf32>
    %184 = arith.addf %182, %183 : vector<16x32xf32>
    %c1 = arith.constant 1 : index
    %c0_65 = arith.constant 0 : index
    %c0_66 = arith.constant 0 : index
    %185 = vector.load %arg1[%c1, %c0_65, %c0_66] : memref<2x6x32xf32, #tpu.memory_space<vmem>>, vector<1x6x32xf32>
    %186 = vector.shape_cast %185 : vector<1x6x32xf32> to vector<6x32xf32>
    %187 = vector.extract_strided_slice %186 {offsets = [0, 0], sizes = [1, 32], strides = [1, 1]} : vector<6x32xf32> to vector<1x32xf32>
    %188 = vector.extract_strided_slice %186 {offsets = [1, 0], sizes = [1, 32], strides = [1, 1]} : vector<6x32xf32> to vector<1x32xf32>
    %189 = vector.extract_strided_slice %186 {offsets = [2, 0], sizes = [1, 32], strides = [1, 1]} : vector<6x32xf32> to vector<1x32xf32>
    %190 = vector.extract_strided_slice %186 {offsets = [3, 0], sizes = [1, 32], strides = [1, 1]} : vector<6x32xf32> to vector<1x32xf32>
    %191 = vector.extract_strided_slice %186 {offsets = [4, 0], sizes = [1, 32], strides = [1, 1]} : vector<6x32xf32> to vector<1x32xf32>
    %192 = vector.extract_strided_slice %186 {offsets = [5, 0], sizes = [1, 32], strides = [1, 1]} : vector<6x32xf32> to vector<1x32xf32>
    %cst_67 = arith.constant dense<0.000000e+00> : vector<16xf32>
    %193 = vector.multi_reduction <add>, %184, %cst_67 [1] : vector<16x32xf32> to vector<16xf32>
    %194 = vector.shape_cast %193 : vector<16xf32> to vector<16x1xf32>
    %cst_68 = arith.constant 3.200000e+01 : f32
    %195 = vector.broadcast %cst_68 : f32 to vector<16x1xf32>
    %196 = arith.divf %194, %195 : vector<16x1xf32>
    %197 = vector.broadcast %196 : vector<16x1xf32> to vector<16x32xf32>
    %198 = arith.subf %184, %197 : vector<16x32xf32>
    %199 = arith.mulf %198, %198 : vector<16x32xf32>
    %cst_69 = arith.constant dense<0.000000e+00> : vector<16xf32>
    %200 = vector.multi_reduction <add>, %199, %cst_69 [1] : vector<16x32xf32> to vector<16xf32>
    %201 = vector.shape_cast %200 : vector<16xf32> to vector<16x1xf32>
    %cst_70 = arith.constant 3.200000e+01 : f32
    %202 = vector.broadcast %cst_70 : f32 to vector<16x1xf32>
    %203 = arith.divf %201, %202 : vector<16x1xf32>
    %204 = vector.broadcast %196 : vector<16x1xf32> to vector<16x32xf32>
    %205 = arith.subf %184, %204 : vector<16x32xf32>
    %cst_71 = arith.constant 9.99999974E-6 : f32
    %206 = vector.broadcast %cst_71 : f32 to vector<16x1xf32>
    %207 = arith.addf %203, %206 : vector<16x1xf32>
    %208 = math.rsqrt %207 : vector<16x1xf32>
    %209 = vector.broadcast %208 : vector<16x1xf32> to vector<16x32xf32>
    %210 = arith.mulf %205, %209 : vector<16x32xf32>
    %211 = vector.broadcast %187 : vector<1x32xf32> to vector<16x32xf32>
    %212 = arith.mulf %210, %211 : vector<16x32xf32>
    %213 = vector.broadcast %188 : vector<1x32xf32> to vector<16x32xf32>
    %214 = arith.addf %212, %213 : vector<16x32xf32>
    %c1_72 = arith.constant 1 : index
    %c0_73 = arith.constant 0 : index
    %c0_74 = arith.constant 0 : index
    %215 = vector.load %arg2[%c1_72, %c0_73, %c0_74] : memref<2x32x96xf32, #tpu.memory_space<vmem>>, vector<1x32x96xf32>
    %216 = vector.shape_cast %215 : vector<1x32x96xf32> to vector<32x96xf32>
    %cst_75 = arith.constant dense<0.000000e+00> : vector<16x96xf32>
    %217 = tpu.matmul %214, %216, %cst_75 {dimension_numbers = #tpu.dot_dimension_numbers<[1], [0], [0], [1], [0, 0, 1, 1], [], []>} : vector<16x32xf32>, vector<32x96xf32>, vector<16x96xf32> -> vector<16x96xf32>
    %c1_76 = arith.constant 1 : index
    %c0_77 = arith.constant 0 : index
    %c0_78 = arith.constant 0 : index
    %218 = vector.load %arg3[%c1_76, %c0_77, %c0_78] : memref<2x1x96xf32, #tpu.memory_space<vmem>>, vector<1x1x96xf32>
    %219 = vector.shape_cast %218 : vector<1x1x96xf32> to vector<1x96xf32>
    %220 = vector.broadcast %219 : vector<1x96xf32> to vector<16x96xf32>
    %221 = arith.addf %217, %220 : vector<16x96xf32>
    %222 = vector.extract_strided_slice %221 {offsets = [0, 0], sizes = [16, 8], strides = [1, 1]} : vector<16x96xf32> to vector<16x8xf32>
    %223 = vector.extract_strided_slice %221 {offsets = [0, 32], sizes = [16, 8], strides = [1, 1]} : vector<16x96xf32> to vector<16x8xf32>
    %224 = vector.extract_strided_slice %221 {offsets = [0, 64], sizes = [16, 8], strides = [1, 1]} : vector<16x96xf32> to vector<16x8xf32>
    %cst_79 = arith.constant dense<0.000000e+00> : vector<16x16xf32>
    %225 = tpu.matmul %222, %223, %cst_79 {dimension_numbers = #tpu.dot_dimension_numbers<[1], [1], [0], [0], [0, 0, 1, 0], [], []>} : vector<16x8xf32>, vector<16x8xf32>, vector<16x16xf32> -> vector<16x16xf32>
    %cst_80 = arith.constant -1.000000e+30 : f32
    %226 = vector.broadcast %cst_80 : f32 to vector<16x16xf32>
    %227 = arith.select %35, %225, %226 : vector<16x16xi1>, vector<16x16xf32>
    %cst_81 = arith.constant dense<0xFF800000> : vector<16xf32>
    %228 = vector.multi_reduction <maximumf>, %227, %cst_81 [1] : vector<16x16xf32> to vector<16xf32>
    %229 = vector.shape_cast %228 : vector<16xf32> to vector<16x1xf32>
    %230 = vector.broadcast %229 : vector<16x1xf32> to vector<16x16xf32>
    %231 = arith.subf %227, %230 : vector<16x16xf32>
    %232 = math.exp %231 : vector<16x16xf32>
    %cst_82 = arith.constant dense<0.000000e+00> : vector<16xf32>
    %233 = vector.multi_reduction <add>, %232, %cst_82 [1] : vector<16x16xf32> to vector<16xf32>
    %234 = vector.shape_cast %233 : vector<16xf32> to vector<16x1xf32>
    %235 = tpu.reciprocal %234 {approx = true} : vector<16x1xf32> -> vector<16x1xf32>
    %236 = vector.broadcast %235 : vector<16x1xf32> to vector<16x16xf32>
    %237 = arith.mulf %232, %236 : vector<16x16xf32>
    %cst_83 = arith.constant dense<0.000000e+00> : vector<16x8xf32>
    %238 = tpu.matmul %237, %224, %cst_83 {dimension_numbers = #tpu.dot_dimension_numbers<[1], [0], [0], [1], [0, 0, 1, 1], [], []>} : vector<16x16xf32>, vector<16x8xf32>, vector<16x8xf32> -> vector<16x8xf32>
    %239 = vector.extract_strided_slice %221 {offsets = [0, 8], sizes = [16, 8], strides = [1, 1]} : vector<16x96xf32> to vector<16x8xf32>
    %240 = vector.extract_strided_slice %221 {offsets = [0, 40], sizes = [16, 8], strides = [1, 1]} : vector<16x96xf32> to vector<16x8xf32>
    %241 = vector.extract_strided_slice %221 {offsets = [0, 72], sizes = [16, 8], strides = [1, 1]} : vector<16x96xf32> to vector<16x8xf32>
    %cst_84 = arith.constant dense<0.000000e+00> : vector<16x16xf32>
    %242 = tpu.matmul %239, %240, %cst_84 {dimension_numbers = #tpu.dot_dimension_numbers<[1], [1], [0], [0], [0, 0, 1, 0], [], []>} : vector<16x8xf32>, vector<16x8xf32>, vector<16x16xf32> -> vector<16x16xf32>
    %cst_85 = arith.constant -1.000000e+30 : f32
    %243 = vector.broadcast %cst_85 : f32 to vector<16x16xf32>
    %244 = arith.select %35, %242, %243 : vector<16x16xi1>, vector<16x16xf32>
    %cst_86 = arith.constant dense<0xFF800000> : vector<16xf32>
    %245 = vector.multi_reduction <maximumf>, %244, %cst_86 [1] : vector<16x16xf32> to vector<16xf32>
    %246 = vector.shape_cast %245 : vector<16xf32> to vector<16x1xf32>
    %247 = vector.broadcast %246 : vector<16x1xf32> to vector<16x16xf32>
    %248 = arith.subf %244, %247 : vector<16x16xf32>
    %249 = math.exp %248 : vector<16x16xf32>
    %cst_87 = arith.constant dense<0.000000e+00> : vector<16xf32>
    %250 = vector.multi_reduction <add>, %249, %cst_87 [1] : vector<16x16xf32> to vector<16xf32>
    %251 = vector.shape_cast %250 : vector<16xf32> to vector<16x1xf32>
    %252 = tpu.reciprocal %251 {approx = true} : vector<16x1xf32> -> vector<16x1xf32>
    %253 = vector.broadcast %252 : vector<16x1xf32> to vector<16x16xf32>
    %254 = arith.mulf %249, %253 : vector<16x16xf32>
    %cst_88 = arith.constant dense<0.000000e+00> : vector<16x8xf32>
    %255 = tpu.matmul %254, %241, %cst_88 {dimension_numbers = #tpu.dot_dimension_numbers<[1], [0], [0], [1], [0, 0, 1, 1], [], []>} : vector<16x16xf32>, vector<16x8xf32>, vector<16x8xf32> -> vector<16x8xf32>
    %256 = vector.extract_strided_slice %221 {offsets = [0, 16], sizes = [16, 8], strides = [1, 1]} : vector<16x96xf32> to vector<16x8xf32>
    %257 = vector.extract_strided_slice %221 {offsets = [0, 48], sizes = [16, 8], strides = [1, 1]} : vector<16x96xf32> to vector<16x8xf32>
    %258 = vector.extract_strided_slice %221 {offsets = [0, 80], sizes = [16, 8], strides = [1, 1]} : vector<16x96xf32> to vector<16x8xf32>
    %cst_89 = arith.constant dense<0.000000e+00> : vector<16x16xf32>
    %259 = tpu.matmul %256, %257, %cst_89 {dimension_numbers = #tpu.dot_dimension_numbers<[1], [1], [0], [0], [0, 0, 1, 0], [], []>} : vector<16x8xf32>, vector<16x8xf32>, vector<16x16xf32> -> vector<16x16xf32>
    %cst_90 = arith.constant -1.000000e+30 : f32
    %260 = vector.broadcast %cst_90 : f32 to vector<16x16xf32>
    %261 = arith.select %35, %259, %260 : vector<16x16xi1>, vector<16x16xf32>
    %cst_91 = arith.constant dense<0xFF800000> : vector<16xf32>
    %262 = vector.multi_reduction <maximumf>, %261, %cst_91 [1] : vector<16x16xf32> to vector<16xf32>
    %263 = vector.shape_cast %262 : vector<16xf32> to vector<16x1xf32>
    %264 = vector.broadcast %263 : vector<16x1xf32> to vector<16x16xf32>
    %265 = arith.subf %261, %264 : vector<16x16xf32>
    %266 = math.exp %265 : vector<16x16xf32>
    %cst_92 = arith.constant dense<0.000000e+00> : vector<16xf32>
    %267 = vector.multi_reduction <add>, %266, %cst_92 [1] : vector<16x16xf32> to vector<16xf32>
    %268 = vector.shape_cast %267 : vector<16xf32> to vector<16x1xf32>
    %269 = tpu.reciprocal %268 {approx = true} : vector<16x1xf32> -> vector<16x1xf32>
    %270 = vector.broadcast %269 : vector<16x1xf32> to vector<16x16xf32>
    %271 = arith.mulf %266, %270 : vector<16x16xf32>
    %cst_93 = arith.constant dense<0.000000e+00> : vector<16x8xf32>
    %272 = tpu.matmul %271, %258, %cst_93 {dimension_numbers = #tpu.dot_dimension_numbers<[1], [0], [0], [1], [0, 0, 1, 1], [], []>} : vector<16x16xf32>, vector<16x8xf32>, vector<16x8xf32> -> vector<16x8xf32>
    %273 = vector.extract_strided_slice %221 {offsets = [0, 24], sizes = [16, 8], strides = [1, 1]} : vector<16x96xf32> to vector<16x8xf32>
    %274 = vector.extract_strided_slice %221 {offsets = [0, 56], sizes = [16, 8], strides = [1, 1]} : vector<16x96xf32> to vector<16x8xf32>
    %275 = vector.extract_strided_slice %221 {offsets = [0, 88], sizes = [16, 8], strides = [1, 1]} : vector<16x96xf32> to vector<16x8xf32>
    %cst_94 = arith.constant dense<0.000000e+00> : vector<16x16xf32>
    %276 = tpu.matmul %273, %274, %cst_94 {dimension_numbers = #tpu.dot_dimension_numbers<[1], [1], [0], [0], [0, 0, 1, 0], [], []>} : vector<16x8xf32>, vector<16x8xf32>, vector<16x16xf32> -> vector<16x16xf32>
    %cst_95 = arith.constant -1.000000e+30 : f32
    %277 = vector.broadcast %cst_95 : f32 to vector<16x16xf32>
    %278 = arith.select %35, %276, %277 : vector<16x16xi1>, vector<16x16xf32>
    %cst_96 = arith.constant dense<0xFF800000> : vector<16xf32>
    %279 = vector.multi_reduction <maximumf>, %278, %cst_96 [1] : vector<16x16xf32> to vector<16xf32>
    %280 = vector.shape_cast %279 : vector<16xf32> to vector<16x1xf32>
    %281 = vector.broadcast %280 : vector<16x1xf32> to vector<16x16xf32>
    %282 = arith.subf %278, %281 : vector<16x16xf32>
    %283 = math.exp %282 : vector<16x16xf32>
    %cst_97 = arith.constant dense<0.000000e+00> : vector<16xf32>
    %284 = vector.multi_reduction <add>, %283, %cst_97 [1] : vector<16x16xf32> to vector<16xf32>
    %285 = vector.shape_cast %284 : vector<16xf32> to vector<16x1xf32>
    %286 = tpu.reciprocal %285 {approx = true} : vector<16x1xf32> -> vector<16x1xf32>
    %287 = vector.broadcast %286 : vector<16x1xf32> to vector<16x16xf32>
    %288 = arith.mulf %283, %287 : vector<16x16xf32>
    %cst_98 = arith.constant dense<0.000000e+00> : vector<16x8xf32>
    %289 = tpu.matmul %288, %275, %cst_98 {dimension_numbers = #tpu.dot_dimension_numbers<[1], [0], [0], [1], [0, 0, 1, 1], [], []>} : vector<16x16xf32>, vector<16x8xf32>, vector<16x8xf32> -> vector<16x8xf32>
    %290 = tpu.concatenate %238, %255, %272, %289 in 1 : vector<16x8xf32>, vector<16x8xf32>, vector<16x8xf32>, vector<16x8xf32> -> vector<16x32xf32>
    %c1_99 = arith.constant 1 : index
    %c0_100 = arith.constant 0 : index
    %c0_101 = arith.constant 0 : index
    %291 = vector.load %arg4[%c1_99, %c0_100, %c0_101] : memref<2x32x32xf32, #tpu.memory_space<vmem>>, vector<1x32x32xf32>
    %292 = vector.shape_cast %291 : vector<1x32x32xf32> to vector<32x32xf32>
    %cst_102 = arith.constant dense<0.000000e+00> : vector<16x32xf32>
    %293 = tpu.matmul %290, %292, %cst_102 {dimension_numbers = #tpu.dot_dimension_numbers<[1], [0], [0], [1], [0, 0, 1, 1], [], []>} : vector<16x32xf32>, vector<32x32xf32>, vector<16x32xf32> -> vector<16x32xf32>
    %294 = vector.broadcast %189 : vector<1x32xf32> to vector<16x32xf32>
    %295 = arith.addf %293, %294 : vector<16x32xf32>
    %296 = arith.addf %184, %295 : vector<16x32xf32>
    %cst_103 = arith.constant dense<0.000000e+00> : vector<16xf32>
    %297 = vector.multi_reduction <add>, %296, %cst_103 [1] : vector<16x32xf32> to vector<16xf32>
    %298 = vector.shape_cast %297 : vector<16xf32> to vector<16x1xf32>
    %cst_104 = arith.constant 3.200000e+01 : f32
    %299 = vector.broadcast %cst_104 : f32 to vector<16x1xf32>
    %300 = arith.divf %298, %299 : vector<16x1xf32>
    %301 = vector.broadcast %300 : vector<16x1xf32> to vector<16x32xf32>
    %302 = arith.subf %296, %301 : vector<16x32xf32>
    %303 = arith.mulf %302, %302 : vector<16x32xf32>
    %cst_105 = arith.constant dense<0.000000e+00> : vector<16xf32>
    %304 = vector.multi_reduction <add>, %303, %cst_105 [1] : vector<16x32xf32> to vector<16xf32>
    %305 = vector.shape_cast %304 : vector<16xf32> to vector<16x1xf32>
    %cst_106 = arith.constant 3.200000e+01 : f32
    %306 = vector.broadcast %cst_106 : f32 to vector<16x1xf32>
    %307 = arith.divf %305, %306 : vector<16x1xf32>
    %308 = vector.broadcast %300 : vector<16x1xf32> to vector<16x32xf32>
    %309 = arith.subf %296, %308 : vector<16x32xf32>
    %cst_107 = arith.constant 9.99999974E-6 : f32
    %310 = vector.broadcast %cst_107 : f32 to vector<16x1xf32>
    %311 = arith.addf %307, %310 : vector<16x1xf32>
    %312 = math.rsqrt %311 : vector<16x1xf32>
    %313 = vector.broadcast %312 : vector<16x1xf32> to vector<16x32xf32>
    %314 = arith.mulf %309, %313 : vector<16x32xf32>
    %315 = vector.broadcast %190 : vector<1x32xf32> to vector<16x32xf32>
    %316 = arith.mulf %314, %315 : vector<16x32xf32>
    %317 = vector.broadcast %191 : vector<1x32xf32> to vector<16x32xf32>
    %318 = arith.addf %316, %317 : vector<16x32xf32>
    %c1_108 = arith.constant 1 : index
    %c0_109 = arith.constant 0 : index
    %c0_110 = arith.constant 0 : index
    %319 = vector.load %arg5[%c1_108, %c0_109, %c0_110] : memref<2x32x64xf32, #tpu.memory_space<vmem>>, vector<1x32x64xf32>
    %320 = vector.shape_cast %319 : vector<1x32x64xf32> to vector<32x64xf32>
    %cst_111 = arith.constant dense<0.000000e+00> : vector<16x64xf32>
    %321 = tpu.matmul %318, %320, %cst_111 {dimension_numbers = #tpu.dot_dimension_numbers<[1], [0], [0], [1], [0, 0, 1, 1], [], []>} : vector<16x32xf32>, vector<32x64xf32>, vector<16x64xf32> -> vector<16x64xf32>
    %c1_112 = arith.constant 1 : index
    %c0_113 = arith.constant 0 : index
    %c0_114 = arith.constant 0 : index
    %322 = vector.load %arg6[%c1_112, %c0_113, %c0_114] : memref<2x1x64xf32, #tpu.memory_space<vmem>>, vector<1x1x64xf32>
    %323 = vector.shape_cast %322 : vector<1x1x64xf32> to vector<1x64xf32>
    %324 = vector.broadcast %323 : vector<1x64xf32> to vector<16x64xf32>
    %325 = arith.addf %321, %324 : vector<16x64xf32>
    %cst_115 = arith.constant 0.000000e+00 : f32
    %326 = vector.broadcast %cst_115 : f32 to vector<16x64xf32>
    %327 = arith.maximumf %325, %326 : vector<16x64xf32>
    %c1_116 = arith.constant 1 : index
    %c0_117 = arith.constant 0 : index
    %c0_118 = arith.constant 0 : index
    %328 = vector.load %arg7[%c1_116, %c0_117, %c0_118] : memref<2x64x32xf32, #tpu.memory_space<vmem>>, vector<1x64x32xf32>
    %329 = vector.shape_cast %328 : vector<1x64x32xf32> to vector<64x32xf32>
    %cst_119 = arith.constant dense<0.000000e+00> : vector<16x32xf32>
    %330 = tpu.matmul %327, %329, %cst_119 {dimension_numbers = #tpu.dot_dimension_numbers<[1], [0], [0], [1], [0, 0, 1, 1], [], []>} : vector<16x64xf32>, vector<64x32xf32>, vector<16x32xf32> -> vector<16x32xf32>
    %331 = arith.addf %296, %330 : vector<16x32xf32>
    %332 = vector.broadcast %192 : vector<1x32xf32> to vector<16x32xf32>
    %333 = arith.addf %331, %332 : vector<16x32xf32>
    %c0_120 = arith.constant 0 : index
    %c0_121 = arith.constant 0 : index
    %334 = vector.load %arg8[%c0_120, %c0_121] : memref<16x32xf32, #tpu.memory_space<vmem>>, vector<16x32xf32>
    tpu.vector_store %arg8[%c0_120, %c0_121], %333 {strides = array<i32>} : memref<16x32xf32, #tpu.memory_space<vmem>>, vector<16x32xf32>,
    return
  }
}

</mosaic_0001>

<bundles_post_ra>
// kernel: tpu_custom_call.1
= control target key start
LH: loop header
LB: loop body
LE: loop exit
PB: predicated region body
PF: predicated region fallthrough
CT: control target
= control target key end

     0   :  { %vm76_vm0 = vcmask 261120   ;;  %s4075_s0 = inlined_call_operand.vmem [shape: f32[16,32], index: 0, kind: input, shape index: {}]   ;;  %s4076_s1 = inlined_call_operand.vmem [shape: f32[2,6,32], index: 1, kind: input, shape index: {}]   ;;  %s4077_s2 = inlined_call_operand.vmem [shape: f32[2,32,96], index: 2, kind: input, shape index: {}]   ;;  %s4078_s3 = inlined_call_operand.vmem [shape: f32[2,1,96], index: 3, kind: input, shape index: {}]   ;;  %s4079_s4 = inlined_call_operand.vmem [shape: f32[2,32,32], index: 4, kind: input, shape index: {}]   ;;  %s4080_s5 = inlined_call_operand.vmem [shape: f32[2,32,64], index: 5, kind: input, shape index: {}]   ;;  %s4081_s6 = inlined_call_operand.vmem [shape: f32[2,1,64], index: 6, kind: input, shape index: {}]   ;;  %s4082_s7 = inlined_call_operand.vmem [shape: f32[2,64,32], index: 7, kind: input, shape index: {}]   ;;  %s4083_s8 = inlined_call_operand.hbm [shape: f32[16,32], index: 8, kind: output, shape index: {}]  }
   0x1   :  { %v3531_v0 = vld [vmem:[%s4075_s0] sm:$0xff]  ;;  %v3536_v1 = vld [vmem:[%s4075_s0 + $0x8] sm:$0xff] }
   0x2   :  { %13 = vsyncpa [#allocation3], 0  ;;  %v77_v2 = vsel %vm76_vm0, %v3531_v0, 0.0  ;;  %v80_v3 = vsel %vm76_vm0, %v3536_v1, 0.0  ;;  %v116_v14 = vld [vmem:[%s4077_s2] sm:$0xff]  ;;  %v117_v15 = vld [vmem:[%s4077_s2 + $0x8] sm:$0xff]  ;;  %v32_v22 = vlaneseq }
   0x3   :  { %78 = vadd.xlane.f32.xlu0 %v77_v2  ;;  %v118_v16 = vld [vmem:[%s4077_s2 + $0x10] sm:$0xff]  ;;  %v3107_v17 = vpack.c.bf16 %v117_v15, %v116_v14  ;;  %v119_v18 = vld [vmem:[%s4077_s2 + $0x18] sm:$0xff]  ;;  %v3564_v29 = vld [vmem:[%s4076_s1] sm:$0x3f]  ;;  %vm214_vm1 = vcmask 64512   ;;  %s3467_s20 = smov 88  }
   0x4   :  { %v3111_v19 = vpack.c.bf16 %v119_v18, %v118_v16  ;;  %v3558_v26 = vshrl.u32 %v32_v22, 7  ;;  %v2680_v41 = vld [vmem:[%s4078_s3] ss:$0 sm:$0xff]  ;;  %s3468_s21 = smov 96   ;;  %s3469_s22 = smov 120   ;;  %vm3598_vm2 = vmpackc.low %vm214_vm1, %vm214_vm1  ;;  %v36_v59 = vand.u32 127, %v32_v22 }
   0x5   :  { %3108 = vmatprep.subr.bf16.mxu1 %v3107_v17  ;;  %vm300_vm5 = vcmask 130048   ;;  %s3470_s23 = smov 56   ;;  %s3471_s24 = smov 64   ;;  %vm1044_vm6 = vcmask 195584   ;;  %vm1278_vm7 = vcmask 523264  }
   0x6   :  { %3110 = vmatpush3.bf16.msra.mxu1 %v3107_v17  ;;  %v106_v28 = vsub.s32 0, %v3558_v26  ;;  %v112_v30 = vsub.s32 1, %v3558_v26  ;;  %v34_v58 = vadd.s32 8, %v3558_v26  ;;  %v65_v61 = vand.u32 1, %v36_v59  ;;  %s3472_s25 = smov 80   ;;  %s3473_s26 = smov 112  }
   0x7   :  { %81 = vadd.xlane.f32.xlu0 %v80_v3  ;;  %3112 = vmatprep.subr.bf16.mxu1 %v3111_v19  ;;  %v41_v62 = vand.u32 1, %v3558_v26  ;;  %s3474_s27 = smov 48   ;;  %s3475_s28 = smov 104  }
   0x8   :  { %v107_v31 = vrot.slane %v3564_v29, %v106_v28  ;;  %v113_v34 = vrot.slane %v3564_v29, %v112_v30  ;;  %v48_v60 = vand.u32 1, %v34_v58  ;;  %s3476_s29 = smov 72   ;;  %s3477_s30 = smov 40  }
   0x9   :  { %vm3620_vm4 = vcmp.eq.s32.totalorder %v41_v62, %v65_v61  ;;  %s3478_s0 = smov 8   ;;  %s3479_s9 = smov 16  }
   0xa   :  { %3114 = vmatpush3.bf16.msra.mxu1 %v3111_v19  ;;  %vm3616_vm3 = vcmp.eq.s32.totalorder %v48_v60, %v65_v61  ;;  %s4084_s18 = smov 24  }
  0x90   :  { %v79_v4 = vpop.xlane.xlu0 %78 }
  0x91   :  { %v84_v5 = vmul.f32 0.03125, %v79_v4 }
  0x93   :  { %v86_v6 = vsub.f32 %v3531_v0, %v84_v5 }
  0x94   :  { %v82_v7 = vpop.xlane.xlu0 %81 }
  0x95   :  { %v85_v8 = vmul.f32 0.03125, %v82_v7  ;;  %v88_v9 = vmul.f32 %v86_v6, %v86_v6 }
  0x97   :  { %v87_v10 = vsub.f32 %v3536_v1, %v85_v8  ;;  %v90_v11 = vsel %vm76_vm0, %v88_v9, 0.0 }
  0x98   :  { %91 = vadd.xlane.f32.xlu1 %v90_v11 }
  0x99   :  { %v89_v12 = vmul.f32 %v87_v10, %v87_v10 }
  0x9b   :  { %v93_v13 = vsel %vm76_vm0, %v89_v12, 0.0 }
  0x9c   :  { %94 = vadd.xlane.f32.xlu1 %v93_v13 }
 0x125   :  { %v92_v20 = vpop.xlane.xlu1 %91 }
 0x126   :  { %v96_v21 = vmul.f32 0.03125, %v92_v20 }
 0x128   :  { %v98_v23 = vadd.f32 1e-05, %v96_v21 }
 0x129   :  { %v95_v24 = vpop.xlane.xlu1 %94 }
 0x12a   :  { %3363 = vrsqrt.f32 %v98_v23  ;;  %v97_v25 = vmul.f32 0.03125, %v95_v24 }
 0x12c   :  { %v99_v27 = vadd.f32 1e-05, %v97_v25 }
 0x12e   :  { %3365 = vrsqrt.f32 %v99_v27 }
 0x134   :  { %v3364_v32 = vpop.eup %3363 }
 0x135   :  { %v102_v33 = vmul.f32 %v3364_v32, %v86_v6 }
 0x137   :  { %v108_v35 = vmul.f32 %v107_v31, %v102_v33 }
 0x138   :  { %v3366_v36 = vpop.eup %3365 }
 0x139   :  { %v103_v37 = vmul.f32 %v3366_v36, %v87_v10  ;;  %v114_v38 = vadd.f32 %v113_v34, %v108_v35 }
 0x13b   :  { %v109_v39 = vmul.f32 %v107_v31, %v103_v37  ;;  %2899 = vmatprep.mubr.msk.f32.mxu1 %vm76_vm0, %v114_v38 }
 0x13d   :  { %v115_v40 = vadd.f32 %v113_v34, %v109_v39 }
 0x13f   :  { %2900 = vmatmul.mubr.msk.f32.vlgmr.msra.gmra.mrb[0].mxu1 %vm76_vm0, %v115_v40 }
 0x212   :  { %v2901_v42 = vpop.f32.mrb[0].mxu1 }
 0x213   :  { %v3578_v43 = vadd.f32 %v2901_v42, %v2680_v41  ;;  %v199_v44 = vpop.f32.mrb[1].mxu1 }
 0x214   :  { %v3580_v45 = vadd.f32 %v2680_v41, %v199_v44 }
 0x216   :  { %2906 = vmatprep.mubr.msk.f32.mxu1 %vm214_vm1, %v3580_v45  ;;  %v3586_v46 = vpack.i.bf16 %v3578_v43, %v3580_v45 }
 0x218   :  { %3289 = vrot.lane.b32.xlu1 %v3586_v46, %s3467_s20  ;;  %3284 = vrot.lane.b32.xlu0 %v3586_v46, %s3468_s21 }
 0x21c   :  { %410 = vrot.lane.b32.xlu1 %v3580_v45, %s3469_s22 }
 0x220   :  { %412 = vrot.lane.b32.xlu1 %v3578_v43, %s3469_s22 }
 0x28a   :  { %v3290_v47 = vpop.permute.xlu1 %3289  ;;  %v3285_v48 = vpop.permute.xlu0 %3284 }
 0x28b   :  { %v3292_v49 = vunpack.i.h.bf16 %v3290_v47  ;;  %v3291_v50 = vunpack.i.l.bf16 %v3290_v47  ;;  %v3287_v51 = vunpack.i.h.bf16 %v3285_v48  ;;  %v3286_v52 = vunpack.i.l.bf16 %v3285_v48 }
 0x28d   :  { %v3115_v54 = vpack.c.bf16 %v3287_v51, %v3286_v52  ;;  %v3125_v55 = vpack.c.bf16 %v3292_v49, %v3291_v50 }
 0x28e   :  { %v411_v56 = vpop.permute.xlu1 %410 }
 0x28f   :  { %3117 = vmatprep.subr.msk.bf16.mxu1 %vm3598_vm2, %v3115_v54 }
 0x290   :  { %3120 = vmatpush3.bf16.xpose.msk.msra.mxu1 %vm3598_vm2, %v3115_v54 }
 0x291   :  { %3127 = vmatprep.subr.msk.bf16.mxu1 %vm3598_vm2, %v3125_v55 }
 0x292   :  { %v413_v57 = vpop.permute.xlu1 %412 }
 0x297   :  { %2907 = vmatmul.mubr.msk.f32.vlgmr.msra.gmra.mrb[2].mxu1 %vm214_vm1, %v3578_v43 }
 0x298   :  { %3130 = vmatpush3.bf16.xpose.msk.msra.mxu1 %vm3598_vm2, %v3125_v55  ;;  %2920 = vmatprep.mubr.msk.f32.mxu1 %vm214_vm1, %v411_v56 }
 0x29f   :  { %2921 = vmatmul.mubr.msk.f32.vlgmr.msra.gmra.mrb[4].mxu1 %vm214_vm1, %v413_v57 }
 0x36a   :  { %v2908_v3 = vpop.f32.mrb[2].mxu1 }
 0x36b   :  { %v299_v4 = vsel %vm3616_vm3, %v2908_v3, -1e+30  ;;  %v289_v5 = vpop.f32.mrb[3].mxu1 }
 0x36c   :  { %v298_v6 = vsel %vm3620_vm4, %v289_v5, -1e+30  ;;  %v304_v7 = vsel %vm300_vm5, %v299_v4, -inf }
 0x36d   :  { %305 = vmax.xlane.f32.xlu1 %v304_v7  ;;  %v301_v8 = vsel %vm300_vm5, %v298_v6, -inf }
 0x36e   :  { %302 = vmax.xlane.f32.xlu0 %v301_v8 }
 0x372   :  { %v2922_v9 = vpop.f32.mrb[4].mxu1 }
 0x373   :  { %v492_v10 = vpop.f32.mrb[5].mxu1  ;;  %v502_v13 = vsel %vm3616_vm3, %v2922_v9, -1e+30 }
 0x374   :  { %v501_v11 = vsel %vm3620_vm4, %v492_v10, -1e+30  ;;  %v506_v14 = vsel %vm300_vm5, %v502_v13, -inf }
 0x375   :  { %v503_v12 = vsel %vm300_vm5, %v501_v11, -inf }
 0x376   :  { %504 = vmax.xlane.f32.xlu0 %v503_v12 }
 0x37a   :  { %507 = vmax.xlane.f32.xlu0 %v506_v14 }
 0x3fa   :  { %v306_v15 = vpop.xlane.xlu1 %305 }
 0x3fb   :  { %v308_v16 = vsub.f32 %v299_v4, %v306_v15  ;;  %v303_v17 = vpop.xlane.xlu0 %302 }
 0x3fc   :  { %v307_v18 = vsub.f32 %v298_v6, %v303_v17 }
 0x3fd   :  { %v311_v19 = vmul.f32 1.442695, %v308_v16 }
 0x3fe   :  { %v309_v20 = vmul.f32 1.442695, %v307_v18 }
 0x3ff   :  { %3367 = vpow2.f32 %v311_v19 }
 0x400   :  { %3369 = vpow2.f32 %v309_v20 }
 0x403   :  { %v505_v21 = vpop.xlane.xlu0 %504 }
 0x404   :  { %v509_v22 = vsub.f32 %v501_v11, %v505_v21 }
 0x406   :  { %v511_v23 = vmul.f32 1.442695, %v509_v22 }
 0x407   :  { %v508_v24 = vpop.xlane.xlu0 %507 }
 0x408   :  { %3371 = vpow2.f32 %v511_v23  ;;  %v510_v25 = vsub.f32 %v502_v13, %v508_v24 }
 0x409   :  { %v3368_v27 = vpop.eup %3367 }
 0x40a   :  { %v3370_v31 = vpop.eup %3369  ;;  %v513_v32 = vmul.f32 1.442695, %v510_v25  ;;  %v316_v33 = vsel %vm300_vm5, %v3368_v27, 0.0 }
 0x40b   :  { %317 = vadd.xlane.f32.xlu1 %v316_v33  ;;  %v313_v34 = vsel %vm300_vm5, %v3370_v31, 0.0 }
 0x40c   :  { %3373 = vpow2.f32 %v513_v32  ;;  %314 = vadd.xlane.f32.xlu0 %v313_v34 }
 0x412   :  { %v3372_v35 = vpop.eup %3371 }
 0x413   :  { %v515_v36 = vsel %vm300_vm5, %v3372_v35, 0.0 }
 0x414   :  { %516 = vadd.xlane.f32.xlu0 %v515_v36 }
 0x416   :  { %v3374_v37 = vpop.eup %3373 }
 0x417   :  { %v518_v38 = vsel %vm300_vm5, %v3374_v37, 0.0 }
 0x418   :  { %519 = vadd.xlane.f32.xlu1 %v518_v38 }
 0x429   :  { %3299 = vrot.lane.b32.xlu1 %v3586_v46, %s3470_s23 }
 0x42a   :  { %3294 = vrot.lane.b32.xlu0 %v3586_v46, %s3471_s24 }
 0x42d   :  { %3304 = vrot.lane.b32.xlu1 %v3586_v46, %s3472_s25 }
 0x42e   :  { %614 = vrot.lane.b32.xlu0 %v3578_v43, %s3473_s26 }
 0x431   :  { %612 = vrot.lane.b32.xlu1 %v3580_v45, %s3473_s26 }
 0x498   :  { %v318_v40 = vpop.xlane.xlu1 %317 }
 0x499   :  { %v315_v39 = vpop.xlane.xlu0 %314 }
 0x49a   :  { %3375 = vrcp.f32 %v315_v39 }
 0x49b   :  { %3377 = vrcp.f32 %v318_v40 }
 0x4a1   :  { %v517_v41 = vpop.xlane.xlu0 %516 }
 0x4a2   :  { %3379 = vrcp.f32 %v517_v41 }
 0x4a4   :  { %v3376_v42 = vpop.eup %3375 }
 0x4a5   :  { %v520_v44 = vpop.xlane.xlu1 %519  ;;  %v3295_v47 = vpop.permute.xlu0 %3294  ;;  %v321_v48 = vmul.f32 %v3376_v42, %v3370_v31 }
 0x4a6   :  { %3381 = vrcp.f32 %v520_v44  ;;  %v3297_v49 = vunpack.i.h.bf16 %v3295_v47  ;;  %v3296_v50 = vunpack.i.l.bf16 %v3295_v47  ;;  %v3378_v52 = vpop.eup %3377 }
 0x4a7   :  { %2913 = vmatprep.mubr.msk.f32.mxu0 %vm300_vm5, %v321_v48  ;;  %v322_v59 = vmul.f32 %v3378_v52, %v3368_v27 }
 0x4a8   :  { %v3121_v51 = vpack.c.bf16 %v3297_v49, %v3296_v50 }
 0x4a9   :  { %v3300_v54 = vpop.permute.xlu1 %3299  ;;  %v615_v8 = vpop.permute.xlu0 %614 }
 0x4aa   :  { %v3302_v55 = vunpack.i.h.bf16 %v3300_v54  ;;  %v3301_v56 = vunpack.i.l.bf16 %v3300_v54  ;;  %3122 = vmatprep.subr.bf16.mxu0 %v3121_v51 }
 0x4ab   :  { %3124 = vmatpush3.bf16.msra.mxu0 %v3121_v51 }
 0x4ac   :  { %v3380_v57 = vpop.eup %3379  ;;  %v3131_v58 = vpack.c.bf16 %v3302_v55, %v3301_v56 }
 0x4ad   :  { %v3305_v60 = vpop.permute.xlu1 %3304  ;;  %v523_v61 = vmul.f32 %v3380_v57, %v3372_v35 }
 0x4ae   :  { %v3307_v62 = vunpack.i.h.bf16 %v3305_v60  ;;  %v3306_v3 = vunpack.i.l.bf16 %v3305_v60  ;;  %2914 = vmatmul.mubr.msk.f32.vlgmr.msra.gmra.mrb[0].mxu0 %vm300_vm5, %v322_v59  ;;  %3132 = vmatprep.subr.bf16.mxu0 %v3131_v58 }
 0x4af   :  { %3134 = vmatpush3.bf16.msra.mxu0 %v3131_v58  ;;  %2927 = vmatprep.mubr.msk.f32.mxu0 %vm300_vm5, %v523_v61 }
 0x4b0   :  { %v3382_v4 = vpop.eup %3381  ;;  %v3135_v5 = vpack.c.bf16 %v3307_v62, %v3306_v3 }
 0x4b1   :  { %v524_v6 = vmul.f32 %v3382_v4, %v3374_v37  ;;  %v613_v7 = vpop.permute.xlu1 %612 }
 0x4b2   :  { %3137 = vmatprep.subr.msk.bf16.mxu0 %vm3598_vm2, %v3135_v5 }
 0x4b3   :  { %2928 = vmatmul.mubr.msk.f32.vlgmr.msra.gmra.mrb[2].mxu0 %vm300_vm5, %v524_v6 }
 0x4b4   :  { %2934 = vmatprep.mubr.msk.f32.mxu0 %vm214_vm1, %v613_v7 }
 0x4b8   :  { %3140 = vmatpush3.bf16.xpose.msk.msra.mxu0 %vm3598_vm2, %v3135_v5 }
 0x4bf   :  { %2935 = vmatmul.mubr.msk.f32.vlgmr.msra.gmra.mrb[4].mxu0 %vm214_vm1, %v615_v8 }
 0x581   :  { %v3660_v9 = vpop.f32.mrb[0].mxu0 }
 0x582   :  { %v3662_v10 = vpop.f32.mrb[1].mxu0 }
 0x586   :  { %v3664_v11 = vpop.f32.mrb[2].mxu0 }
 0x587   :  { %v3666_v12 = vpop.f32.mrb[3].mxu0 }
 0x592   :  { %v2936_v13 = vpop.f32.mrb[4].mxu0 }
 0x593   :  { %v704_v14 = vsel %vm3616_vm3, %v2936_v13, -1e+30  ;;  %v694_v15 = vpop.f32.mrb[5].mxu0 }
 0x594   :  { %v703_v16 = vsel %vm3620_vm4, %v694_v15, -1e+30  ;;  %v708_v17 = vsel %vm300_vm5, %v704_v14, -inf }
 0x595   :  { %709 = vmax.xlane.f32.xlu0 %v708_v17  ;;  %v705_v18 = vsel %vm300_vm5, %v703_v16, -inf }
 0x596   :  { %706 = vmax.xlane.f32.xlu1 %v705_v18 }
 0x5a7   :  { %3309 = vrot.lane.b32.xlu1 %v3586_v46, %s3474_s27 }
 0x5ab   :  { %814 = vrot.lane.b32.xlu1 %v3580_v45, %s3475_s28 }
 0x5af   :  { %816 = vrot.lane.b32.xlu1 %v3578_v43, %s3475_s28 }
 0x622   :  { %v710_v19 = vpop.xlane.xlu0 %709 }
 0x623   :  { %v712_v20 = vsub.f32 %v704_v14, %v710_v19  ;;  %v707_v21 = vpop.xlane.xlu1 %706 }
 0x624   :  { %v711_v22 = vsub.f32 %v703_v16, %v707_v21  ;;  %v1047_v21 = vld [vmem:[%s4079_s4] sm:$0xff] }
 0x625   :  { %v715_v23 = vmul.f32 1.442695, %v712_v20 }
 0x626   :  { %v713_v24 = vmul.f32 1.442695, %v711_v22  ;;  %v1049_v22 = vld [vmem:[%s4079_s4 + $0x10] sm:$0xff] }
 0x627   :  { %3383 = vpow2.f32 %v715_v23  ;;  %v3310_v25 = vpop.permute.xlu1 %3309 }
 0x628   :  { %v3312_v27 = vunpack.i.h.bf16 %v3310_v25  ;;  %v3311_v31 = vunpack.i.l.bf16 %v3310_v25  ;;  %3385 = vpow2.f32 %v713_v24  ;;  %v1050_v24 = vld [vmem:[%s4079_s4 + $0x18] sm:$0xff] }
 0x629   :  { %v3159_v25 = vpack.c.bf16 %v1050_v24, %v1049_v22  ;;  %v1166_v24 = vsub.s32 3, %v3558_v26 }
 0x62a   :  { %v3141_v32 = vpack.c.bf16 %v3312_v27, %v3311_v31 }
 0x62b   :  { %v815_v48 = vpop.permute.xlu1 %814 }
 0x62c   :  { %3142 = vmatprep.subr.bf16.mxu1 %v3141_v32 }
 0x62d   :  { %3144 = vmatpush3.bf16.msra.mxu1 %v3141_v32 }
 0x62f   :  { %v817_v49 = vpop.permute.xlu1 %816 }
 0x631   :  { %v3384_v33 = vpop.eup %3383 }
 0x632   :  { %v720_v45 = vsel %vm300_vm5, %v3384_v33, 0.0  ;;  %v3386_v34 = vpop.eup %3385 }
 0x633   :  { %721 = vadd.xlane.f32.xlu0 %v720_v45  ;;  %v717_v43 = vsel %vm300_vm5, %v3386_v34, 0.0 }
 0x637   :  { %718 = vadd.xlane.f32.xlu0 %v717_v43 }
 0x64d   :  { %3314 = vrot.lane.b32.xlu0 %v3586_v46, %s3476_s29 }
 0x6c0   :  { %v722_v35 = vpop.xlane.xlu0 %721 }
 0x6c1   :  { %3387 = vrcp.f32 %v722_v35 }
 0x6c4   :  { %v719_v36 = vpop.xlane.xlu0 %718 }
 0x6c5   :  { %3389 = vrcp.f32 %v719_v36 }
 0x6c8   :  { %v3315_v37 = vpop.permute.xlu0 %3314 }
 0x6c9   :  { %v3317_v38 = vunpack.i.h.bf16 %v3315_v37  ;;  %v3316_v39 = vunpack.i.l.bf16 %v3315_v37 }
 0x6cb   :  { %v3145_v40 = vpack.c.bf16 %v3317_v38, %v3316_v39  ;;  %v3388_v41 = vpop.eup %3387 }
 0x6cc   :  { %v726_v47 = vmul.f32 %v3388_v41, %v3384_v33 }
 0x6cd   :  { %3147 = vmatprep.subr.msk.bf16.mxu1 %vm3598_vm2, %v3145_v40 }
 0x6cf   :  { %v3390_v42 = vpop.eup %3389 }
 0x6d0   :  { %v725_v44 = vmul.f32 %v3390_v42, %v3386_v34 }
 0x6d2   :  { %2941 = vmatprep.mubr.msk.f32.mxu1 %vm300_vm5, %v725_v44 }
 0x6d3   :  { %2942 = vmatmul.mubr.msk.f32.vlgmr.msra.gmra.mrb[6].mxu1 %vm300_vm5, %v726_v47 }
 0x6d4   :  { %3150 = vmatpush3.bf16.xpose.msk.msra.mxu1 %vm3598_vm2, %v3145_v40  ;;  %2948 = vmatprep.mubr.msk.f32.mxu1 %vm214_vm1, %v815_v48 }
 0x6db   :  { %2949 = vmatmul.mubr.msk.f32.vlgmr.msra.gmra.mrb[8].mxu1 %vm214_vm1, %v817_v49 }
 0x7a6   :  { %v2943_v50 = vpop.f32.mrb[6].mxu1 }
 0x7a7   :  { %v805_v51 = vpop.f32.mrb[7].mxu1 }
 0x7ae   :  { %v2950_v52 = vpop.f32.mrb[8].mxu1 }
 0x7af   :  { %v906_v54 = vsel %vm3616_vm3, %v2950_v52, -1e+30  ;;  %v896_v55 = vpop.f32.mrb[9].mxu1 }
 0x7b0   :  { %v905_v56 = vsel %vm3620_vm4, %v896_v55, -1e+30  ;;  %v910_v57 = vsel %vm300_vm5, %v906_v54, -inf }
 0x7b1   :  { %911 = vmax.xlane.f32.xlu0 %v910_v57  ;;  %v907_v58 = vsel %vm300_vm5, %v905_v56, -inf }
 0x7b2   :  { %908 = vmax.xlane.f32.xlu1 %v907_v58 }
 0x7c3   :  { %3319 = vrot.lane.b32.xlu1 %v3586_v46, %s3477_s30 }
 0x7c7   :  { %1020 = vrot.lane.b32.xlu1 %v3664_v11, %s3478_s0 }
 0x7cb   :  { %1026 = vrot.lane.b32.xlu1 %v805_v51, %s3479_s9 }
 0x7cf   :  { %1028 = vrot.lane.b32.xlu1 %v2943_v50, %s3479_s9 }
 0x83e   :  { %v912_v59 = vpop.xlane.xlu0 %911 }
 0x83f   :  { %v914_v60 = vsub.f32 %v906_v54, %v912_v59  ;;  %v909_v61 = vpop.xlane.xlu1 %908 }
 0x840   :  { %v913_v62 = vsub.f32 %v905_v56, %v909_v61 }
 0x841   :  { %v917_v3 = vmul.f32 1.442695, %v914_v60 }
 0x842   :  { %v915_v4 = vmul.f32 1.442695, %v913_v62  ;;  %v1176_v62 = vld [vmem:[%s4080_s5] sm:$0xff] }
 0x843   :  { %v3320_v5 = vpop.permute.xlu1 %3319 }
 0x844   :  { %3391 = vpow2.f32 %v915_v4  ;;  %v3322_v6 = vunpack.i.h.bf16 %v3320_v5  ;;  %v3321_v7 = vunpack.i.l.bf16 %v3320_v5  ;;  %v1178_v5 = vld [vmem:[%s4080_s5 + $0x10] sm:$0xff] }
 0x845   :  { %3393 = vpow2.f32 %v917_v3  ;;  %v1177_v3 = vld [vmem:[%s4080_s5 + $0x8] sm:$0xff] }
 0x846   :  { %v3151_v46 = vpack.c.bf16 %v3322_v6, %v3321_v7  ;;  %v3163_v4 = vpack.c.bf16 %v1177_v3, %v1176_v62  ;;  %v1179_v6 = vld [vmem:[%s4080_s5 + $0x18] sm:$0xff] }
 0x847   :  { %v1021_v32 = vpop.permute.xlu1 %1020  ;;  %v3167_v7 = vpack.c.bf16 %v1179_v6, %v1178_v5 }
 0x848   :  { %3152 = vmatprep.subr.bf16.mxu0 %v3151_v46  ;;  %v1041_v36 = vsel %vm214_vm1, %v3660_v9, %v1021_v32  ;;  %3164 = vmatprep.subr.bf16.mxu1 %v3163_v4 }
 0x849   :  { %3154 = vmatpush3.bf16.msra.mxu0 %v3151_v46  ;;  %3166 = vmatpush3.bf16.msra.mxu1 %v3163_v4  ;;  %v1270_v46 = vld [vmem:[%s4082_s7] sm:$0xff] }
 0x84a   :  { %3168 = vmatprep.subr.bf16.mxu1 %v3167_v7 }
 0x84b   :  { %v1027_v33 = vpop.permute.xlu1 %1026 }
 0x84d   :  { %3170 = vmatpush3.bf16.msra.mxu1 %v3167_v7 }
 0x84e   :  { %v3392_v8 = vpop.eup %3391 }
 0x84f   :  { %v919_v11 = vsel %vm300_vm5, %v3392_v8, 0.0  ;;  %v3394_v13 = vpop.eup %3393  ;;  %v1029_v34 = vpop.permute.xlu1 %1028 }
 0x850   :  { %920 = vadd.xlane.f32.xlu0 %v919_v11  ;;  %v922_v14 = vsel %vm300_vm5, %v3394_v13, 0.0  ;;  %v1043_v39 = vsel %vm300_vm5, %v1041_v36, %v1029_v34  ;;  %v1272_v11 = vld [vmem:[%s4082_s7 + $0x10] sm:$0xff] }
 0x854   :  { %923 = vadd.xlane.f32.xlu0 %v922_v14  ;;  %v1273_v14 = vld [vmem:[%s4082_s7 + $0x18] sm:$0xff] }
 0x86a   :  { %1018 = vrot.lane.b32.xlu0 %v3666_v12, %s3478_s0  ;;  %v1048_v12 = vld [vmem:[%s4079_s4 + $0x8] sm:$0xff] }
 0x86b   :  { %v3155_v23 = vpack.c.bf16 %v1048_v12, %v1047_v21 }
 0x86d   :  { %3156 = vmatprep.subr.bf16.mxu0 %v3155_v23 }
 0x8dd   :  { %v921_v15 = vpop.xlane.xlu0 %920 }
 0x8de   :  { %3395 = vrcp.f32 %v921_v15  ;;  %v3175_v15 = vpack.c.bf16 %v1273_v14, %v1272_v11  ;;  %v2718_v14 = vld [vmem:[%s4077_s2 + $0x38] sm:$0xff] }
 0x8e1   :  { %v924_v16 = vpop.xlane.xlu0 %923 }
 0x8e2   :  { %3397 = vrcp.f32 %v924_v16  ;;  %v1274_v16 = vld [vmem:[%s4082_s7 + $0x20] sm:$0xff] }
 0x8e5   :  { %v1019_v45 = vpop.permute.xlu0 %1018 }
 0x8e6   :  { %v1040_v43 = vsel %vm214_vm1, %v3662_v10, %v1019_v45  ;;  %v1053_v10 = vsub.s32 2, %v3558_v26 }
 0x8e7   :  { %v1042_v37 = vsel %vm300_vm5, %v1040_v43, %v1027_v33 }
 0x8e8   :  { %v3396_v17 = vpop.eup %3395  ;;  %v1054_v42 = vrot.slane %v3564_v29, %v1053_v10 }
 0x8e9   :  { %v927_v18 = vmul.f32 %v3396_v17, %v3392_v8  ;;  %v1271_v8 = vld [vmem:[%s4082_s7 + $0x8] sm:$0xff] }
 0x8ea   :  { %v1275_v17 = vld [vmem:[%s4082_s7 + $0x28] sm:$0xff] }
 0x8eb   :  { %2955 = vmatprep.mubr.msk.f32.mxu0 %vm300_vm5, %v927_v18  ;;  %v3179_v18 = vpack.c.bf16 %v1275_v17, %v1274_v16 }
 0x8ec   :  { %v3398_v19 = vpop.eup %3397 }
 0x8ed   :  { %v928_v20 = vmul.f32 %v3398_v19, %v3394_v13  ;;  %v3171_v13 = vpack.c.bf16 %v1271_v8, %v1270_v46  ;;  %v2715_v46 = vld [vmem:[%s4077_s2 + $0x20] sm:$0xff]  ;;  %v2716_v8 = vld [vmem:[%s4077_s2 + $0x28] sm:$0xff] }
 0x8ee   :  { %v3187_v11 = vpack.c.bf16 %v2716_v8, %v2715_v46 }
 0x8ef   :  { %2956 = vmatmul.mubr.msk.f32.vlgmr.msra.gmra.mrb[6].mxu0 %vm300_vm5, %v928_v20 }
 0x8f0   :  { %3158 = vmatpush3.bf16.msra.mxu0 %v3155_v23  ;;  %3188 = vmatprep.subr.bf16.mxu1 %v3187_v11 }
 0x8f1   :  { %3160 = vmatprep.subr.bf16.mxu0 %v3159_v25 }
 0x8f4   :  { %3162 = vmatpush3.bf16.msra.mxu0 %v3159_v25  ;;  %v1172_v25 = vsub.s32 4, %v3558_v26 }
 0x8f5   :  { %3172 = vmatprep.subr.bf16.mxu0 %v3171_v13 }
 0x8f6   :  { %v1173_v33 = vrot.slane %v3564_v29, %v1172_v25 }
 0x9c2   :  { %v2957_v27 = vpop.f32.mrb[6].mxu0 }
 0x9c3   :  { %1036 = vrot.lane.b32.xlu1 %v2957_v27, %s4084_s18  ;;  %v1007_v31 = vpop.f32.mrb[7].mxu0  ;;  %v1167_v27 = vrot.slane %v3564_v29, %v1166_v24 }
 0x9c4   :  { %1034 = vrot.lane.b32.xlu0 %v1007_v31, %s4084_s18 }
 0xa35   :  { %v1037_v35 = vpop.permute.xlu1 %1036 }
 0xa36   :  { %v1035_v38 = vpop.permute.xlu0 %1034  ;;  %v1046_v41 = vsel %vm1044_vm6, %v1043_v39, %v1037_v35  ;;  %v1277_v39 = vld [vmem:[%s4082_s7 + $0x38] sm:$0xff] }
 0xa37   :  { %v1045_v40 = vsel %vm1044_vm6, %v1042_v37, %v1035_v38  ;;  %v1276_v38 = vld [vmem:[%s4082_s7 + $0x30] sm:$0xff] }
 0xa38   :  { %2966 = vmatprep.mubr.msk.f32.mxu0 %vm76_vm0, %v1045_v40  ;;  %v3183_v40 = vpack.c.bf16 %v1277_v39, %v1276_v38 }
 0xa39   :  { %2967 = vmatmul.mubr.msk.f32.vlgmr.msra.gmra.mrb[8].mxu0 %vm76_vm0, %v1046_v41  ;;  %v2709_v41 = vld [vmem:[%s4081_s6] ss:$0 sm:$0xff] }
 0xa3a   :  { %3174 = vmatpush3.bf16.msra.mxu0 %v3171_v13  ;;  %v2717_v13 = vld [vmem:[%s4077_s2 + $0x30] sm:$0xff] }
 0xa3b   :  { %3176 = vmatprep.subr.bf16.mxu0 %v3175_v15 }
 0xa3e   :  { %3178 = vmatpush3.bf16.msra.mxu0 %v3175_v15  ;;  %v3191_v15 = vpack.c.bf16 %v2718_v14, %v2717_v13 }
 0xa3f   :  { %3180 = vmatprep.subr.bf16.mxu0 %v3179_v18 }
 0xa42   :  { %3182 = vmatpush3.bf16.msra.mxu0 %v3179_v18 }
 0xa43   :  { %3184 = vmatprep.subr.bf16.mxu0 %v3183_v40 }
 0xa46   :  { %3186 = vmatpush3.bf16.msra.mxu0 %v3183_v40 }
 0xb0c   :  { %v2968_v9 = vpop.f32.mrb[8].mxu0 }
 0xb0d   :  { %v1133_v44 = vadd.f32 %v2968_v9, %v1054_v42  ;;  %v1127_v47 = vpop.f32.mrb[9].mxu0 }
 0xb0e   :  { %v1128_v48 = vadd.f32 %v1127_v47, %v1054_v42 }
 0xb0f   :  { %v3739_v49 = vadd.f32 %v1133_v44, %v3536_v1 }
 0xb10   :  { %v3742_v50 = vadd.f32 %v1128_v48, %v3531_v0 }
 0xb11   :  { %v1141_v51 = vsel %vm76_vm0, %v3739_v49, 0.0 }
 0xb12   :  { %1142 = vadd.xlane.f32.xlu1 %v1141_v51  ;;  %v1138_v52 = vsel %vm76_vm0, %v3742_v50, 0.0 }
 0xb13   :  { %1139 = vadd.xlane.f32.xlu0 %v1138_v52  ;;  %v1364_v52 = vsub.s32 5, %v3558_v26 }
 0xb9f   :  { %v1143_v54 = vpop.xlane.xlu1 %1142 }
 0xba0   :  { %v1145_v55 = vmul.f32 0.03125, %v1143_v54  ;;  %v1140_v56 = vpop.xlane.xlu0 %1139  ;;  %v1365_v54 = vrot.slane %v3564_v29, %v1364_v52 }
 0xba1   :  { %v1144_v57 = vmul.f32 0.03125, %v1140_v56 }
 0xba2   :  { %v1147_v58 = vsub.f32 %v3739_v49, %v1145_v55 }
 0xba3   :  { %v1146_v1 = vsub.f32 %v3742_v50, %v1144_v57 }
 0xba4   :  { %v1149_v60 = vmul.f32 %v1147_v58, %v1147_v58 }
 0xba5   :  { %v1148_v59 = vmul.f32 %v1146_v1, %v1146_v1 }
 0xba6   :  { %v1153_v61 = vsel %vm76_vm0, %v1149_v60, 0.0 }
 0xba7   :  { %v1150_v0 = vsel %vm76_vm0, %v1148_v59, 0.0 }
 0xba8   :  { %1151 = vadd.xlane.f32.xlu0 %v1150_v0 }
 0xbac   :  { %1154 = vadd.xlane.f32.xlu0 %v1153_v61 }
 0xc35   :  { %v1152_v19 = vpop.xlane.xlu0 %1151 }
 0xc36   :  { %v1156_v20 = vmul.f32 0.03125, %v1152_v19 }
 0xc38   :  { %v1158_v21 = vadd.f32 1e-05, %v1156_v20 }
 0xc39   :  { %v1155_v12 = vpop.xlane.xlu0 %1154 }
 0xc3a   :  { %3399 = vrsqrt.f32 %v1158_v21  ;;  %v1157_v22 = vmul.f32 0.03125, %v1155_v12  ;;  %v3836_v12 = vld [vmem:[%s4076_s1 + $0x8] sm:$0x3f] }
 0xc3c   :  { %v1159_v23 = vadd.f32 1e-05, %v1157_v22  ;;  %v1399_v22 = vrot.slane %v3836_v12, %v106_v28  ;;  %v2720_v28 = vld [vmem:[%s4078_s3 + $0x1] ss:$0 sm:$0xff] }
 0xc3e   :  { %3401 = vrsqrt.f32 %v1159_v23 }
 0xc44   :  { %v3400_v31 = vpop.eup %3399 }
 0xc45   :  { %v1162_v32 = vmul.f32 %v3400_v31, %v1146_v1  ;;  %v1405_v31 = vrot.slane %v3836_v12, %v112_v30 }
 0xc47   :  { %v1168_v45 = vmul.f32 %v1167_v27, %v1162_v32 }
 0xc48   :  { %v3402_v34 = vpop.eup %3401 }
 0xc49   :  { %v1163_v43 = vmul.f32 %v3402_v34, %v1147_v58  ;;  %v1174_v35 = vadd.f32 %v1173_v33, %v1168_v45 }
 0xc4b   :  { %v1169_v36 = vmul.f32 %v1167_v27, %v1163_v43  ;;  %2977 = vmatprep.mubr.msk.f32.mxu1 %vm76_vm0, %v1174_v35 }
 0xc4d   :  { %v1175_v37 = vadd.f32 %v1173_v33, %v1169_v36 }
 0xc4f   :  { %2978 = vmatmul.mubr.msk.f32.vlgmr.msra.gmra.mrb[10].mxu1 %vm76_vm0, %v1175_v37 }
 0xc50   :  { %3190 = vmatpush3.bf16.msra.mxu1 %v3187_v11 }
 0xc51   :  { %3192 = vmatprep.subr.bf16.mxu1 %v3191_v15 }
 0xc54   :  { %3194 = vmatpush3.bf16.msra.mxu1 %v3191_v15 }
 0xd22   :  { %v2979_v42 = vpop.f32.mrb[10].mxu1 }
 0xd23   :  { %v1265_v9 = vadd.f32 %v2979_v42, %v2709_v41  ;;  %v1259_v44 = vpop.f32.mrb[11].mxu1 }
 0xd24   :  { %v1260_v47 = vadd.f32 %v2709_v41, %v1259_v44 }
 0xd25   :  { %v1269_v51 = vmax.f32 %v1265_v9, 0.0 }
 0xd26   :  { %v1268_v48 = vmax.f32 %v1260_v47, 0.0 }
 0xd28   :  { %2996 = vmatprep.mubr.msk.f32.mxu0 %vm1278_vm7, %v1268_v48 }
 0xd29   :  { %2997 = vmatmul.mubr.msk.f32.vlgmr.msra.gmra.mrb[10].mxu0 %vm1278_vm7, %v1269_v51 }
 0xdfc   :  { %v2998_v55 = vpop.f32.mrb[10].mxu0 }
 0xdfd   :  { %v1361_v56 = vadd.f32 %v2998_v55, %v3739_v49  ;;  %v1351_v57 = vpop.f32.mrb[11].mxu0 }
 0xdfe   :  { %v1360_v58 = vadd.f32 %v1351_v57, %v3742_v50 }
 0xdff   :  { %v3809_v1 = vadd.f32 %v1365_v54, %v1361_v56 }
 0xe00   :  { %v3811_v59 = vadd.f32 %v1365_v54, %v1360_v58 }
 0xe01   :  { %v1373_v0 = vsel %vm76_vm0, %v3809_v1, 0.0 }
 0xe02   :  { %1374 = vadd.xlane.f32.xlu1 %v1373_v0  ;;  %v1370_v60 = vsel %vm76_vm0, %v3811_v59, 0.0 }
 0xe03   :  { %1371 = vadd.xlane.f32.xlu0 %v1370_v60 }
 0xe8f   :  { %v1375_v61 = vpop.xlane.xlu1 %1374 }
 0xe90   :  { %v1377_v29 = vmul.f32 0.03125, %v1375_v61  ;;  %v1372_v62 = vpop.xlane.xlu0 %1371 }
 0xe91   :  { %v1376_v3 = vmul.f32 0.03125, %v1372_v62 }
 0xe92   :  { %v1379_v49 = vsub.f32 %v3809_v1, %v1377_v29 }
 0xe93   :  { %v1378_v50 = vsub.f32 %v3811_v59, %v1376_v3 }
 0xe94   :  { %v1381_v4 = vmul.f32 %v1379_v49, %v1379_v49 }
 0xe95   :  { %v1380_v5 = vmul.f32 %v1378_v50, %v1378_v50 }
 0xe96   :  { %v1385_v6 = vsel %vm76_vm0, %v1381_v4, 0.0 }
 0xe97   :  { %1386 = vadd.xlane.f32.xlu1 %v1385_v6  ;;  %v1382_v7 = vsel %vm76_vm0, %v1380_v5, 0.0 }
 0xe98   :  { %1383 = vadd.xlane.f32.xlu0 %v1382_v7 }
 0xf24   :  { %v1387_v16 = vpop.xlane.xlu1 %1386 }
 0xf25   :  { %v1389_v17 = vmul.f32 0.03125, %v1387_v16  ;;  %v1384_v18 = vpop.xlane.xlu0 %1383 }
 0xf26   :  { %v1388_v19 = vmul.f32 0.03125, %v1384_v18 }
 0xf27   :  { %v1391_v20 = vadd.f32 1e-05, %v1389_v17 }
 0xf28   :  { %v1390_v21 = vadd.f32 1e-05, %v1388_v19 }
 0xf29   :  { %3403 = vrsqrt.f32 %v1391_v20 }
 0xf2a   :  { %3405 = vrsqrt.f32 %v1390_v21 }
 0xf33   :  { %v3404_v23 = vpop.eup %3403 }
 0xf34   :  { %v3406_v27 = vpop.eup %3405  ;;  %v1395_v32 = vmul.f32 %v3404_v23, %v1379_v49 }
 0xf35   :  { %v1394_v33 = vmul.f32 %v3406_v27, %v1378_v50 }
 0xf36   :  { %v1401_v45 = vmul.f32 %v1399_v22, %v1395_v32 }
 0xf37   :  { %v1400_v34 = vmul.f32 %v1399_v22, %v1394_v33 }
 0xf38   :  { %v1407_v43 = vadd.f32 %v1405_v31, %v1401_v45 }
 0xf39   :  { %v1406_v35 = vadd.f32 %v1405_v31, %v1400_v34 }
 0xf3b   :  { %3007 = vmatprep.mubr.msk.f32.mxu1 %vm76_vm0, %v1406_v35 }
 0xf3c   :  { %3008 = vmatmul.mubr.msk.f32.vlgmr.msra.gmra.mrb[12].mxu1 %vm76_vm0, %v1407_v43 }
0x100f   :  { %v3009_v36 = vpop.f32.mrb[12].mxu1 }
0x1010   :  { %v3849_v37 = vadd.f32 %v3009_v36, %v2720_v28  ;;  %v1493_v38 = vpop.f32.mrb[13].mxu1 }
0x1011   :  { %v3851_v39 = vadd.f32 %v2720_v28, %v1493_v38 }
0x1013   :  { %3014 = vmatprep.mubr.msk.f32.mxu1 %vm214_vm1, %v3851_v39  ;;  %v3857_v30 = vpack.i.bf16 %v3849_v37, %v3851_v39 }
0x1015   :  { %3329 = vrot.lane.b32.xlu1 %v3857_v30, %s3467_s20  ;;  %3324 = vrot.lane.b32.xlu0 %v3857_v30, %s3468_s21 }
0x1019   :  { %1702 = vrot.lane.b32.xlu1 %v3851_v39, %s3469_s22 }
0x101d   :  { %1704 = vrot.lane.b32.xlu1 %v3849_v37, %s3469_s22 }
0x1087   :  { %v3330_v40 = vpop.permute.xlu1 %3329  ;;  %v3325_v41 = vpop.permute.xlu0 %3324 }
0x1088   :  { %v3332_v42 = vunpack.i.h.bf16 %v3330_v40  ;;  %v3331_v9 = vunpack.i.l.bf16 %v3330_v40  ;;  %v3327_v44 = vunpack.i.h.bf16 %v3325_v41  ;;  %v3326_v47 = vunpack.i.l.bf16 %v3325_v41 }
0x108a   :  { %v3195_v48 = vpack.c.bf16 %v3327_v44, %v3326_v47  ;;  %v3205_v51 = vpack.c.bf16 %v3332_v42, %v3331_v9 }
0x108b   :  { %v1703_v54 = vpop.permute.xlu1 %1702 }
0x108c   :  { %3197 = vmatprep.subr.msk.bf16.mxu1 %vm3598_vm2, %v3195_v48 }
0x108d   :  { %3200 = vmatpush3.bf16.xpose.msk.msra.mxu1 %vm3598_vm2, %v3195_v48 }
0x108e   :  { %3207 = vmatprep.subr.msk.bf16.mxu1 %vm3598_vm2, %v3205_v51 }
0x108f   :  { %v1705_v55 = vpop.permute.xlu1 %1704 }
0x1094   :  { %3015 = vmatmul.mubr.msk.f32.vlgmr.msra.gmra.mrb[14].mxu1 %vm214_vm1, %v3849_v37 }
0x1095   :  { %3210 = vmatpush3.bf16.xpose.msk.msra.mxu1 %vm3598_vm2, %v3205_v51  ;;  %3028 = vmatprep.mubr.msk.f32.mxu1 %vm214_vm1, %v1703_v54 }
0x109c   :  { %3029 = vmatmul.mubr.msk.f32.vlgmr.msra.gmra.mrb[16].mxu1 %vm214_vm1, %v1705_v55 }
0x1167   :  { %v3016_v56 = vpop.f32.mrb[14].mxu1 }
0x1168   :  { %v1592_v57 = vsel %vm3616_vm3, %v3016_v56, -1e+30  ;;  %v1582_v58 = vpop.f32.mrb[15].mxu1 }
0x1169   :  { %v1591_v0 = vsel %vm3620_vm4, %v1582_v58, -1e+30  ;;  %v1596_v60 = vsel %vm300_vm5, %v1592_v57, -inf }
0x116a   :  { %1597 = vmax.xlane.f32.xlu1 %v1596_v60  ;;  %v1593_v61 = vsel %vm300_vm5, %v1591_v0, -inf }
0x116b   :  { %1594 = vmax.xlane.f32.xlu0 %v1593_v61 }
0x116f   :  { %v3030_v29 = vpop.f32.mrb[16].mxu1 }
0x1170   :  { %v1784_v62 = vpop.f32.mrb[17].mxu1  ;;  %v1794_v50 = vsel %vm3616_vm3, %v3030_v29, -1e+30 }
0x1171   :  { %v1793_v3 = vsel %vm3620_vm4, %v1784_v62, -1e+30  ;;  %v1798_v4 = vsel %vm300_vm5, %v1794_v50, -inf }
0x1172   :  { %v1795_v49 = vsel %vm300_vm5, %v1793_v3, -inf }
0x1173   :  { %1796 = vmax.xlane.f32.xlu0 %v1795_v49 }
0x1177   :  { %1799 = vmax.xlane.f32.xlu0 %v1798_v4 }
0x11f7   :  { %v1598_v5 = vpop.xlane.xlu1 %1597 }
0x11f8   :  { %v1600_v6 = vsub.f32 %v1592_v57, %v1598_v5  ;;  %v1595_v7 = vpop.xlane.xlu0 %1594 }
0x11f9   :  { %v1599_v46 = vsub.f32 %v1591_v0, %v1595_v7 }
0x11fa   :  { %v1603_v8 = vmul.f32 1.442695, %v1600_v6 }
0x11fb   :  { %v1601_v11 = vmul.f32 1.442695, %v1599_v46 }
0x11fc   :  { %3407 = vpow2.f32 %v1603_v8 }
0x11fd   :  { %3409 = vpow2.f32 %v1601_v11 }
0x1200   :  { %v1797_v13 = vpop.xlane.xlu0 %1796 }
0x1201   :  { %v1801_v14 = vsub.f32 %v1793_v3, %v1797_v13 }
0x1203   :  { %v1803_v15 = vmul.f32 1.442695, %v1801_v14 }
0x1204   :  { %v1800_v16 = vpop.xlane.xlu0 %1799 }
0x1205   :  { %3411 = vpow2.f32 %v1803_v15  ;;  %v1802_v17 = vsub.f32 %v1794_v50, %v1800_v16 }
0x1206   :  { %v3408_v18 = vpop.eup %3407 }
0x1207   :  { %v3410_v19 = vpop.eup %3409  ;;  %v1805_v20 = vmul.f32 1.442695, %v1802_v17  ;;  %v1608_v21 = vsel %vm300_vm5, %v3408_v18, 0.0 }
0x1208   :  { %1609 = vadd.xlane.f32.xlu1 %v1608_v21  ;;  %v1605_v22 = vsel %vm300_vm5, %v3410_v19, 0.0 }
0x1209   :  { %3413 = vpow2.f32 %v1805_v20  ;;  %1606 = vadd.xlane.f32.xlu0 %v1605_v22 }
0x120f   :  { %v3412_v23 = vpop.eup %3411 }
0x1210   :  { %v1807_v27 = vsel %vm300_vm5, %v3412_v23, 0.0 }
0x1211   :  { %1808 = vadd.xlane.f32.xlu0 %v1807_v27 }
0x1213   :  { %v3414_v31 = vpop.eup %3413 }
0x1214   :  { %v1810_v32 = vsel %vm300_vm5, %v3414_v31, 0.0 }
0x1215   :  { %1811 = vadd.xlane.f32.xlu1 %v1810_v32 }
0x1226   :  { %3339 = vrot.lane.b32.xlu1 %v3857_v30, %s3470_s23 }
0x1227   :  { %3334 = vrot.lane.b32.xlu0 %v3857_v30, %s3471_s24 }
0x122a   :  { %3344 = vrot.lane.b32.xlu1 %v3857_v30, %s3472_s25 }
0x122b   :  { %1906 = vrot.lane.b32.xlu0 %v3849_v37, %s3473_s26 }
0x122e   :  { %1904 = vrot.lane.b32.xlu1 %v3851_v39, %s3473_s26 }
0x1295   :  { %v1610_v45 = vpop.xlane.xlu1 %1609 }
0x1296   :  { %v1607_v33 = vpop.xlane.xlu0 %1606 }
0x1297   :  { %3415 = vrcp.f32 %v1607_v33 }
0x1298   :  { %3417 = vrcp.f32 %v1610_v45 }
0x129e   :  { %v1809_v34 = vpop.xlane.xlu0 %1808 }
0x129f   :  { %3419 = vrcp.f32 %v1809_v34 }
0x12a1   :  { %v3416_v43 = vpop.eup %3415 }
0x12a2   :  { %v1812_v35 = vpop.xlane.xlu1 %1811  ;;  %v3335_v28 = vpop.permute.xlu0 %3334  ;;  %v1613_v36 = vmul.f32 %v3416_v43, %v3410_v19 }
0x12a3   :  { %3421 = vrcp.f32 %v1812_v35  ;;  %v3337_v38 = vunpack.i.h.bf16 %v3335_v28  ;;  %v3336_v40 = vunpack.i.l.bf16 %v3335_v28  ;;  %v3418_v42 = vpop.eup %3417 }
0x12a4   :  { %3021 = vmatprep.mubr.msk.f32.mxu0 %vm300_vm5, %v1613_v36  ;;  %v1614_v51 = vmul.f32 %v3418_v42, %v3408_v18 }
0x12a5   :  { %v3201_v41 = vpack.c.bf16 %v3337_v38, %v3336_v40 }
0x12a6   :  { %v3340_v9 = vpop.permute.xlu1 %3339  ;;  %v1907_v62 = vpop.permute.xlu0 %1906 }
0x12a7   :  { %v3342_v44 = vunpack.i.h.bf16 %v3340_v9  ;;  %v3341_v47 = vunpack.i.l.bf16 %v3340_v9  ;;  %3202 = vmatprep.subr.bf16.mxu0 %v3201_v41 }
0x12a8   :  { %3204 = vmatpush3.bf16.msra.mxu0 %v3201_v41 }
0x12a9   :  { %v3420_v48 = vpop.eup %3419  ;;  %v3211_v54 = vpack.c.bf16 %v3342_v44, %v3341_v47 }
0x12aa   :  { %v3345_v55 = vpop.permute.xlu1 %3344  ;;  %v1815_v56 = vmul.f32 %v3420_v48, %v3412_v23 }
0x12ab   :  { %v3347_v57 = vunpack.i.h.bf16 %v3345_v55  ;;  %v3346_v58 = vunpack.i.l.bf16 %v3345_v55  ;;  %3022 = vmatmul.mubr.msk.f32.vlgmr.msra.gmra.mrb[12].mxu0 %vm300_vm5, %v1614_v51  ;;  %3212 = vmatprep.subr.bf16.mxu0 %v3211_v54 }
0x12ac   :  { %3214 = vmatpush3.bf16.msra.mxu0 %v3211_v54  ;;  %3035 = vmatprep.mubr.msk.f32.mxu0 %vm300_vm5, %v1815_v56 }
0x12ad   :  { %v3422_v0 = vpop.eup %3421  ;;  %v3215_v60 = vpack.c.bf16 %v3347_v57, %v3346_v58 }
0x12ae   :  { %v1816_v61 = vmul.f32 %v3422_v0, %v3414_v31  ;;  %v1905_v29 = vpop.permute.xlu1 %1904 }
0x12af   :  { %3217 = vmatprep.subr.msk.bf16.mxu0 %vm3598_vm2, %v3215_v60 }
0x12b0   :  { %3036 = vmatmul.mubr.msk.f32.vlgmr.msra.gmra.mrb[14].mxu0 %vm300_vm5, %v1816_v61 }
0x12b1   :  { %3042 = vmatprep.mubr.msk.f32.mxu0 %vm214_vm1, %v1905_v29 }
0x12b5   :  { %3220 = vmatpush3.bf16.xpose.msk.msra.mxu0 %vm3598_vm2, %v3215_v60 }
0x12bc   :  { %3043 = vmatmul.mubr.msk.f32.vlgmr.msra.gmra.mrb[16].mxu0 %vm214_vm1, %v1907_v62 }
0x137e   :  { %v3915_v3 = vpop.f32.mrb[12].mxu0 }
0x137f   :  { %v3917_v49 = vpop.f32.mrb[13].mxu0 }
0x1383   :  { %v3919_v50 = vpop.f32.mrb[14].mxu0 }
0x1384   :  { %v3921_v4 = vpop.f32.mrb[15].mxu0 }
0x138f   :  { %v3044_v5 = vpop.f32.mrb[16].mxu0 }
0x1390   :  { %v1996_v6 = vsel %vm3616_vm3, %v3044_v5, -1e+30  ;;  %v1986_v7 = vpop.f32.mrb[17].mxu0 }
0x1391   :  { %v1995_v46 = vsel %vm3620_vm4, %v1986_v7, -1e+30  ;;  %v2000_v8 = vsel %vm300_vm5, %v1996_v6, -inf }
0x1392   :  { %2001 = vmax.xlane.f32.xlu0 %v2000_v8  ;;  %v1997_v11 = vsel %vm300_vm5, %v1995_v46, -inf }
0x1393   :  { %1998 = vmax.xlane.f32.xlu1 %v1997_v11 }
0x13a4   :  { %3349 = vrot.lane.b32.xlu1 %v3857_v30, %s3474_s27  ;;  %s4092_s27 = smov 24  }
0x13a8   :  { %2106 = vrot.lane.b32.xlu1 %v3851_v39, %s3475_s28 }
0x13ac   :  { %2108 = vrot.lane.b32.xlu1 %v3849_v37, %s3475_s28 }
0x141f   :  { %v2002_v13 = vpop.xlane.xlu0 %2001 }
0x1420   :  { %v2004_v14 = vsub.f32 %v1996_v6, %v2002_v13  ;;  %v1999_v15 = vpop.xlane.xlu1 %1998 }
0x1421   :  { %v2003_v16 = vsub.f32 %v1995_v46, %v1999_v15  ;;  %v2749_v15 = vld [vmem:[%s4079_s4 + $0x30] sm:$0xff] }
0x1422   :  { %v2007_v17 = vmul.f32 1.442695, %v2004_v14  ;;  %v2747_v14 = vld [vmem:[%s4079_s4 + $0x20] sm:$0xff] }
0x1423   :  { %v2005_v18 = vmul.f32 1.442695, %v2003_v16 }
0x1424   :  { %3423 = vpow2.f32 %v2007_v17  ;;  %v3350_v19 = vpop.permute.xlu1 %3349  ;;  %v2750_v17 = vld [vmem:[%s4079_s4 + $0x38] sm:$0xff] }
0x1425   :  { %v3352_v20 = vunpack.i.h.bf16 %v3350_v19  ;;  %v3351_v21 = vunpack.i.l.bf16 %v3350_v19  ;;  %3425 = vpow2.f32 %v2005_v18  ;;  %v3239_v18 = vpack.c.bf16 %v2750_v17, %v2749_v15 }
0x1426   :  { %v2465_v17 = vrot.slane %v3836_v12, %v1172_v25  ;;  %v2758_v25 = vld [vmem:[%s4081_s6 + $0x1] ss:$0 sm:$0xff] }
0x1427   :  { %v3221_v22 = vpack.c.bf16 %v3352_v20, %v3351_v21 }
0x1428   :  { %v2107_v40 = vpop.permute.xlu1 %2106 }
0x1429   :  { %3222 = vmatprep.subr.bf16.mxu1 %v3221_v22 }
0x142a   :  { %3224 = vmatpush3.bf16.msra.mxu1 %v3221_v22 }
0x142c   :  { %v2109_v41 = vpop.permute.xlu1 %2108 }
0x142e   :  { %v3424_v23 = vpop.eup %3423 }
0x142f   :  { %v2012_v39 = vsel %vm300_vm5, %v3424_v23, 0.0  ;;  %v3426_v27 = vpop.eup %3425 }
0x1430   :  { %2013 = vadd.xlane.f32.xlu0 %v2012_v39  ;;  %v2009_v37 = vsel %vm300_vm5, %v3426_v27, 0.0 }
0x1434   :  { %2010 = vadd.xlane.f32.xlu0 %v2009_v37 }
0x144a   :  { %3354 = vrot.lane.b32.xlu0 %v3857_v30, %s3476_s29 }
0x14bd   :  { %v2014_v31 = vpop.xlane.xlu0 %2013 }
0x14be   :  { %3427 = vrcp.f32 %v2014_v31 }
0x14c1   :  { %v2011_v32 = vpop.xlane.xlu0 %2010 }
0x14c2   :  { %3429 = vrcp.f32 %v2011_v32 }
0x14c5   :  { %v3355_v33 = vpop.permute.xlu0 %3354 }
0x14c6   :  { %v3357_v45 = vunpack.i.h.bf16 %v3355_v33  ;;  %v3356_v34 = vunpack.i.l.bf16 %v3355_v33 }
0x14c8   :  { %v3225_v43 = vpack.c.bf16 %v3357_v45, %v3356_v34  ;;  %v3428_v35 = vpop.eup %3427 }
0x14c9   :  { %v2018_v38 = vmul.f32 %v3428_v35, %v3424_v23 }
0x14ca   :  { %3227 = vmatprep.subr.msk.bf16.mxu1 %vm3598_vm2, %v3225_v43 }
0x14cc   :  { %v3430_v28 = vpop.eup %3429 }
0x14cd   :  { %v2017_v36 = vmul.f32 %v3430_v28, %v3426_v27 }
0x14cf   :  { %3049 = vmatprep.mubr.msk.f32.mxu1 %vm300_vm5, %v2017_v36 }
0x14d0   :  { %3050 = vmatmul.mubr.msk.f32.vlgmr.msra.gmra.mrb[18].mxu1 %vm300_vm5, %v2018_v38 }
0x14d1   :  { %3230 = vmatpush3.bf16.xpose.msk.msra.mxu1 %vm3598_vm2, %v3225_v43  ;;  %3056 = vmatprep.mubr.msk.f32.mxu1 %vm214_vm1, %v2107_v40 }
0x14d8   :  { %3057 = vmatmul.mubr.msk.f32.vlgmr.msra.gmra.mrb[20].mxu1 %vm214_vm1, %v2109_v41 }
0x15a3   :  { %v3051_v42 = vpop.f32.mrb[18].mxu1 }
0x15a4   :  { %v2097_v9 = vpop.f32.mrb[19].mxu1 }
0x15ab   :  { %v3058_v44 = vpop.f32.mrb[20].mxu1 }
0x15ac   :  { %v2198_v47 = vsel %vm3616_vm3, %v3058_v44, -1e+30  ;;  %v2188_v48 = vpop.f32.mrb[21].mxu1 }
0x15ad   :  { %v2197_v51 = vsel %vm3620_vm4, %v2188_v48, -1e+30  ;;  %v2202_v54 = vsel %vm300_vm5, %v2198_v47, -inf }
0x15ae   :  { %2203 = vmax.xlane.f32.xlu0 %v2202_v54  ;;  %v2199_v53 = vsel %vm300_vm5, %v2197_v51, -inf }
0x15af   :  { %2200 = vmax.xlane.f32.xlu1 %v2199_v53 }
0x15c0   :  { %3359 = vrot.lane.b32.xlu1 %v3857_v30, %s3477_s30 }
0x15c4   :  { %2312 = vrot.lane.b32.xlu1 %v3919_v50, %s3478_s0 }
0x15c8   :  { %2318 = vrot.lane.b32.xlu1 %v2097_v9, %s3479_s9 }
0x15cc   :  { %2320 = vrot.lane.b32.xlu1 %v3051_v42, %s3479_s9 }
0x163b   :  { %v2204_v63 = vpop.xlane.xlu0 %2203 }
0x163c   :  { %v2206_v55 = vsub.f32 %v2198_v47, %v2204_v63  ;;  %v2201_v2 = vpop.xlane.xlu1 %2200  ;;  %v2753_v63 = vld [vmem:[%s4080_s5 + $0x20] sm:$0xff] }
0x163d   :  { %v2205_v56 = vsub.f32 %v2197_v51, %v2201_v2 }
0x163e   :  { %v2209_v57 = vmul.f32 1.442695, %v2206_v55  ;;  %v2754_v55 = vld [vmem:[%s4080_s5 + $0x28] sm:$0xff] }
0x163f   :  { %v2207_v58 = vmul.f32 1.442695, %v2205_v56  ;;  %v3243_v2 = vpack.c.bf16 %v2754_v55, %v2753_v63  ;;  %v2755_v56 = vld [vmem:[%s4080_s5 + $0x30] sm:$0xff] }
0x1640   :  { %v3360_v0 = vpop.permute.xlu1 %3359 }
0x1641   :  { %3431 = vpow2.f32 %v2207_v58  ;;  %v3362_v60 = vunpack.i.h.bf16 %v3360_v0  ;;  %v3361_v61 = vunpack.i.l.bf16 %v3360_v0  ;;  %3244 = vmatprep.subr.bf16.mxu1 %v3243_v2  ;;  %v2761_v0 = vld [vmem:[%s4082_s7 + $0x40] sm:$0xff] }
0x1642   :  { %3433 = vpow2.f32 %v2209_v57  ;;  %3246 = vmatpush3.bf16.msra.mxu1 %v3243_v2  ;;  %v2756_v57 = vld [vmem:[%s4080_s5 + $0x38] sm:$0xff] }
0x1643   :  { %v3231_v29 = vpack.c.bf16 %v3362_v60, %v3361_v61  ;;  %v3247_v58 = vpack.c.bf16 %v2756_v57, %v2755_v56  ;;  %v2762_v60 = vld [vmem:[%s4082_s7 + $0x48] sm:$0xff]  ;;  %v2763_v61 = vld [vmem:[%s4082_s7 + $0x50] sm:$0xff] }
0x1644   :  { %v2313_v21 = vpop.permute.xlu1 %2312 }
0x1645   :  { %3232 = vmatprep.subr.bf16.mxu0 %v3231_v29  ;;  %v2333_v31 = vsel %vm214_vm1, %v3915_v3, %v2313_v21  ;;  %3248 = vmatprep.subr.bf16.mxu1 %v3247_v58 }
0x1646   :  { %3234 = vmatpush3.bf16.msra.mxu0 %v3231_v29  ;;  %3250 = vmatpush3.bf16.msra.mxu1 %v3247_v58  ;;  %v3251_v29 = vpack.c.bf16 %v2762_v60, %v2761_v0 }
0x1648   :  { %v2319_v22 = vpop.permute.xlu1 %2318 }
0x164b   :  { %v3432_v30 = vpop.eup %3431 }
0x164c   :  { %v2211_v62 = vsel %vm300_vm5, %v3432_v30, 0.0  ;;  %v3434_v50 = vpop.eup %3433  ;;  %v2321_v39 = vpop.permute.xlu1 %2320 }
0x164d   :  { %2212 = vadd.xlane.f32.xlu0 %v2211_v62  ;;  %v2214_v5 = vsel %vm300_vm5, %v3434_v50, 0.0  ;;  %v2335_v45 = vsel %vm300_vm5, %v2333_v31, %v2321_v39  ;;  %v2768_v39 = vld [vmem:[%s4082_s7 + $0x78] sm:$0xff] }
0x1651   :  { %2215 = vadd.xlane.f32.xlu0 %v2214_v5  ;;  %v2766_v5 = vld [vmem:[%s4082_s7 + $0x68] sm:$0xff] }
0x1667   :  { %2310 = vrot.lane.b32.xlu0 %v3921_v4, %s3478_s0  ;;  %v2748_v4 = vld [vmem:[%s4079_s4 + $0x28] sm:$0xff] }
0x1668   :  { %v3235_v16 = vpack.c.bf16 %v2748_v4, %v2747_v14  ;;  %v2459_v4 = vrot.slane %v3836_v12, %v1166_v24  ;;  %v2767_v24 = vld [vmem:[%s4082_s7 + $0x70] sm:$0xff] }
0x166a   :  { %3236 = vmatprep.subr.bf16.mxu0 %v3235_v16 }
0x16da   :  { %v2213_v6 = vpop.xlane.xlu0 %2212 }
0x16db   :  { %3435 = vrcp.f32 %v2213_v6 }
0x16de   :  { %v2216_v7 = vpop.xlane.xlu0 %2215 }
0x16df   :  { %3437 = vrcp.f32 %v2216_v7 }
0x16e2   :  { %v2311_v23 = vpop.permute.xlu0 %2310 }
0x16e3   :  { %v2332_v27 = vsel %vm214_vm1, %v3917_v49, %v2311_v23  ;;  %v2346_v49 = vrot.slane %v3836_v12, %v1053_v10 }
0x16e4   :  { %v2334_v32 = vsel %vm300_vm5, %v2332_v27, %v2319_v22  ;;  %v3263_v27 = vpack.c.bf16 %v2768_v39, %v2767_v24 }
0x16e5   :  { %v3436_v46 = vpop.eup %3435 }
0x16e6   :  { %v2219_v8 = vmul.f32 %v3436_v46, %v3432_v30  ;;  %v2764_v30 = vld [vmem:[%s4082_s7 + $0x58] sm:$0xff] }
0x16e7   :  { %v3255_v62 = vpack.c.bf16 %v2764_v30, %v2763_v61 }
0x16e8   :  { %3063 = vmatprep.mubr.msk.f32.mxu0 %vm300_vm5, %v2219_v8 }
0x16e9   :  { %v3438_v11 = vpop.eup %3437 }
0x16ea   :  { %v2220_v13 = vmul.f32 %v3438_v11, %v3434_v50  ;;  %v2765_v50 = vld [vmem:[%s4082_s7 + $0x60] sm:$0xff]  ;;  %s3481_s7 = smov [#allocation2]  }
0x16eb   :  { %v3259_v6 = vpack.c.bf16 %v2766_v5, %v2765_v50  ;;  %s2669_s6 = sshll.u32 %s3481_s7, 4  ;;  %s2670_s6 = int_to_ptr.vmem [resolvable:$true] %s2669_s6 }
0x16ec   :  { %3064 = vmatmul.mubr.msk.f32.vlgmr.msra.gmra.mrb[18].mxu0 %vm300_vm5, %v2220_v13  ;;  %p3448_p1 = scmp.lt.s32.totalorder %s2670_s6, %s2670_s6 }
0x16ed   :  { %3238 = vmatpush3.bf16.msra.mxu0 %v3235_v16 }
0x16ee   :  { %3240 = vmatprep.subr.bf16.mxu0 %v3239_v18 }
0x16f1   :  { %3242 = vmatpush3.bf16.msra.mxu0 %v3239_v18 }
0x16f2   :  { %3252 = vmatprep.subr.bf16.mxu0 %v3251_v29 }
0x17bf   :  { %v3065_v19 = vpop.f32.mrb[18].mxu0 }
0x17c0   :  { %2328 = vrot.lane.b32.xlu1 %v3065_v19, %s4092_s27  ;;  %v2299_v20 = vpop.f32.mrb[19].mxu0 }
0x17c1   :  { %2326 = vrot.lane.b32.xlu0 %v2299_v20, %s4092_s27  ;;  %s3443_s27 = scalar_lea.vmem %s2670_s6, 256 }
0x17c2   :  { %p3444_p0 = scmp.ne.s32.totalorder %s2670_s6, %s3443_s27  ;;  %p3449_p2 = scmp.lt.s32.totalorder %s3443_s27, %s3443_s27 }
0x17c4   :  { %p3450_p3 = por %p3449_p2, %p3448_p1 }
0x17c6   :  { %p3451_p4 = pnand %p3450_p3, %p3444_p0 }
0x1832   :  { %v2329_v37 = vpop.permute.xlu1 %2328 }
0x1833   :  { %v2327_v33 = vpop.permute.xlu0 %2326  ;;  %v2337_v43 = vsel %vm1044_vm6, %v2335_v45, %v2329_v37 }
0x1834   :  { %v2336_v34 = vsel %vm1044_vm6, %v2334_v32, %v2327_v33 }
0x1835   :  { %3074 = vmatprep.mubr.msk.f32.mxu0 %vm76_vm0, %v2336_v34 }
0x1836   :  { %3075 = vmatmul.mubr.msk.f32.vlgmr.msra.gmra.mrb[20].mxu0 %vm76_vm0, %v2337_v43  ;;  %v2659_v43 = vrot.slane %v3836_v12, %v1364_v52 }
0x1837   :  { %3254 = vmatpush3.bf16.msra.mxu0 %v3251_v29 }
0x1838   :  { %3256 = vmatprep.subr.bf16.mxu0 %v3255_v62 }
0x183b   :  { %3258 = vmatpush3.bf16.msra.mxu0 %v3255_v62 }
0x183c   :  { %3260 = vmatprep.subr.bf16.mxu0 %v3259_v6 }
0x183f   :  { %3262 = vmatpush3.bf16.msra.mxu0 %v3259_v6 }
0x1840   :  { %3264 = vmatprep.subr.bf16.mxu0 %v3263_v27 }
0x1843   :  { %3266 = vmatpush3.bf16.msra.mxu0 %v3263_v27 }
0x1909   :  { %v3076_v35 = vpop.f32.mrb[20].mxu0 }
0x190a   :  { %v2425_v28 = vadd.f32 %v3076_v35, %v2346_v49  ;;  %v2419_v3 = vpop.f32.mrb[21].mxu0 }
0x190b   :  { %v2420_v36 = vadd.f32 %v2419_v3, %v2346_v49 }
0x190c   :  { %v3993_v38 = vadd.f32 %v2425_v28, %v3809_v1 }
0x190d   :  { %v3996_v40 = vadd.f32 %v2420_v36, %v3811_v59 }
0x190e   :  { %v2433_v41 = vsel %vm76_vm0, %v3993_v38, 0.0 }
0x190f   :  { %2434 = vadd.xlane.f32.xlu1 %v2433_v41  ;;  %v2430_v42 = vsel %vm76_vm0, %v3996_v40, 0.0 }
0x1910   :  { %2431 = vadd.xlane.f32.xlu0 %v2430_v42 }
0x199c   :  { %v2435_v9 = vpop.xlane.xlu1 %2434 }
0x199d   :  { %v2437_v10 = vmul.f32 0.03125, %v2435_v9  ;;  %v2432_v44 = vpop.xlane.xlu0 %2431 }
0x199e   :  { %v2436_v47 = vmul.f32 0.03125, %v2432_v44 }
0x199f   :  { %v2439_v48 = vsub.f32 %v3993_v38, %v2437_v10 }
0x19a0   :  { %v2438_v1 = vsub.f32 %v3996_v40, %v2436_v47 }
0x19a1   :  { %v2441_v54 = vmul.f32 %v2439_v48, %v2439_v48 }
0x19a2   :  { %v2440_v51 = vmul.f32 %v2438_v1, %v2438_v1 }
0x19a3   :  { %v2445_v53 = vsel %vm76_vm0, %v2441_v54, 0.0 }
0x19a4   :  { %v2442_v59 = vsel %vm76_vm0, %v2440_v51, 0.0 }
0x19a5   :  { %2443 = vadd.xlane.f32.xlu0 %v2442_v59 }
0x19a9   :  { %2446 = vadd.xlane.f32.xlu0 %v2445_v53 }
0x1a32   :  { %v2444_v7 = vpop.xlane.xlu0 %2443 }
0x1a33   :  { %v2448_v46 = vmul.f32 0.03125, %v2444_v7 }
0x1a35   :  { %v2450_v8 = vadd.f32 1e-05, %v2448_v46 }
0x1a36   :  { %v2447_v11 = vpop.xlane.xlu0 %2446 }
0x1a37   :  { %3439 = vrsqrt.f32 %v2450_v8  ;;  %v2449_v13 = vmul.f32 0.03125, %v2447_v11 }
0x1a39   :  { %v2451_v14 = vadd.f32 1e-05, %v2449_v13 }
0x1a3b   :  { %3441 = vrsqrt.f32 %v2451_v14 }
0x1a41   :  { %v3440_v15 = vpop.eup %3439 }
0x1a42   :  { %v2454_v16 = vmul.f32 %v3440_v15, %v2438_v1 }
0x1a44   :  { %v2460_v18 = vmul.f32 %v2459_v4, %v2454_v16 }
0x1a45   :  { %v3442_v19 = vpop.eup %3441 }
0x1a46   :  { %v2455_v20 = vmul.f32 %v3442_v19, %v2439_v48  ;;  %v2466_v21 = vadd.f32 %v2465_v17, %v2460_v18 }
0x1a48   :  { %v2461_v22 = vmul.f32 %v2459_v4, %v2455_v20  ;;  %3085 = vmatprep.mubr.msk.f32.mxu1 %vm76_vm0, %v2466_v21 }
0x1a4a   :  { %v2467_v23 = vadd.f32 %v2465_v17, %v2461_v22 }
0x1a4c   :  { %3086 = vmatmul.mubr.msk.f32.vlgmr.msra.gmra.mrb[22].mxu1 %vm76_vm0, %v2467_v23 }
0x1b1f   :  { %v3087_v37 = vpop.f32.mrb[22].mxu1 }
0x1b20   :  { %v2559_v31 = vadd.f32 %v3087_v37, %v2758_v25  ;;  %v2553_v32 = vpop.f32.mrb[23].mxu1 }
0x1b21   :  { %v2554_v33 = vadd.f32 %v2758_v25, %v2553_v32 }
0x1b22   :  { %v2563_v34 = vmax.f32 %v2559_v31, 0.0 }
0x1b23   :  { %v2562_v45 = vmax.f32 %v2554_v33, 0.0 }
0x1b25   :  { %3104 = vmatprep.mubr.msk.f32.mxu0 %vm1278_vm7, %v2562_v45 }
0x1b26   :  { %3105 = vmatmul.mubr.msk.f32.vlgmr.msra.gmra.mrb[22].mxu0 %vm1278_vm7, %v2563_v34 }
0x1bf9   :  { %v3106_v49 = vpop.f32.mrb[22].mxu0 }
0x1bfa   :  { %v2655_v35 = vadd.f32 %v3106_v49, %v3993_v38  ;;  %v2645_v28 = vpop.f32.mrb[23].mxu0 }
0x1bfb   :  { %v2654_v3 = vadd.f32 %v2645_v28, %v3996_v40 }
0x1bfc   :  { %v2661_v36 = vadd.f32 %v2659_v43, %v2655_v35 }
0x1bfd   :  { %v2660_v41 = vadd.f32 %v2659_v43, %v2654_v3 }
0x1bfe   :  { %2663 = vst.msk [vmem:[#allocation2 + $0x8] sm:$0xff] %vm76_vm0, %v2661_v36 }
0x1bff   :  { %2662 = vst.msk [vmem:[#allocation2] sm:$0xff] %vm76_vm0, %v2660_v41 }
0x1c00   :  { %3454 = shalt.err (!%p3451_p4)
}
0x1c01   :  { %s3455_s29 = scalar_lea.hbm %s4083_s8, 256 }
0x1c02   :  { %p3456_p5 = scmp.ne.s32.totalorder %s4083_s8, %s3455_s29  ;;  %p3459_p6 = scmp.lt.u32.totalorder %s3455_s29, %s4083_s8 }
0x1c04   :  { %p3461_p7 = pnand %p3459_p6, %p3456_p5 }
0x1c06   :  { %3464 = shalt.err (!%p3461_p7)
}
0x1c07   :  { %s3482_s17 = smov 128  }
0x1c08   :  { %2675 = dma.vmem_to_hbm [thread:$0]  %s2670_s6, 256, %s4083_s8, [#allocation3], %s3482_s17, %s3482_s17, %s3478_s0  }
0x1c09   :  { %3465 = dma.done.wait [#allocation3], 256  }
0x1c0a   :  { %3466 = vsyncadd [#allocation3], 4294967040 }
0x1c0b   :  { %2679 = vsyncpa [#allocation3], 1 }

</bundles_post_ra>
